<compile_context>
chip_gen: v5e
topology: v5e:2x2
jax: 0.10.0
libtpu: 0.0.40
codegen_flags: <defaults>
</compile_context>

<pallas_src>
import math
import functools

import jax
import jax.numpy as jnp
from jax.experimental import pallas as pl
from jax.experimental.pallas import tpu as pltpu


# ----------------------------------------------------------------------------
# Pallas kernel: one full encoder layer per batch element (grid = (B,))
# ----------------------------------------------------------------------------
def _encoder_layer_kernel(
    x_ref,                                   # (1, S, H)  f32
    ln1_g, ln1_b,                            # (1, H)     f32
    wqkv, bqkv,                              # (H, 3H) bf16, (1, 3H) f32 (q part pre-scaled)
    wo, bo,                                  # (H, H)  bf16, (1, H)  f32
    ln2_g, ln2_b,                            # (1, H)     f32
    w1, b1,                                  # (H, I)  bf16, (1, I)  f32
    w2, b2,                                  # (I, H)  bf16, (1, H)  f32
    cos_r, sin_r,                            # (S, H) f32 (cos tiled per head, sin signed+tiled)
    o_ref,                                   # (1, S, H)
    *, num_heads, head_dim, eps=1e-5,
):
    f32 = jnp.float32
    bf16 = jnp.bfloat16

    x = x_ref[0].astype(f32)                 # (S, H)
    S, H = x.shape
    half = head_dim // 2

    def layer_norm(v, g, b):
        mu = jnp.mean(v, axis=-1, keepdims=True)
        var = jnp.mean((v - mu) * (v - mu), axis=-1, keepdims=True)
        return (v - mu) * jax.lax.rsqrt(var + eps) * g + b

    def mm(a_bf16, w_bf16):
        # a @ w on the MXU: bf16 operands, f32 accumulation
        return jax.lax.dot_general(
            a_bf16, w_bf16, (((1,), (0,)), ((), ())),
            preferred_element_type=f32)

    # ---- attention branch: x + MHA(LN1(x)) --------------------------------
    h1 = layer_norm(x, ln1_g[...], ln1_b[...]).astype(bf16)

    qkv = mm(h1, wqkv[...]) + bqkv[...]       # (S, 3H) f32; q columns already / sqrt(head_dim)
    q_lin = qkv[:, :H]
    k_lin = qkv[:, H:2 * H]
    v_lin = qkv[:, 2 * H:]

    cos = cos_r[...]                          # (S, H)
    sin_s = sin_r[...]                        # (S, H), rotate-half sign folded in

    def rope_full(t):
        # per-head swap of the two halves; negation lives in sin_s.
        pieces = []
        for h in range(num_heads):
            lo = h * head_dim
            pieces.append(t[:, lo + half:lo + head_dim])
            pieces.append(t[:, lo:lo + half])
        rot = jnp.concatenate(pieces, axis=-1)            # (S, H)
        return t * cos + rot * sin_s

    q_rope = rope_full(q_lin).astype(bf16)    # (S, H)
    k_rope = rope_full(k_lin).astype(bf16)
    v_bf = v_lin.astype(bf16)

    wo_full = wo[...]                         # (H, H) bf16
    attn_acc = jnp.zeros((S, H), f32)
    for h in range(num_heads):                # static unroll; fused per-head out-projection
        lo = h * head_dim
        qh = q_rope[:, lo:lo + head_dim]
        kh = k_rope[:, lo:lo + head_dim]
        vh = v_bf[:, lo:lo + head_dim]
        s = jax.lax.dot_general(              # (S, S) scores (scale already folded into q)
            qh, kh, (((1,), (1,)), ((), ())), preferred_element_type=f32)
        s = s - jnp.max(s, axis=-1, keepdims=True)
        p = jnp.exp(s)
        p = p * pl.reciprocal(jnp.sum(p, axis=-1, keepdims=True), approx=True)
        ctx = jax.lax.dot_general(            # (S, head_dim)
            p.astype(bf16), vh, (((1,), (0,)), ((), ())), preferred_element_type=f32)
        attn_acc = attn_acc + jax.lax.dot_general(
            ctx.astype(bf16), wo_full[lo:lo + head_dim, :],
            (((1,), (0,)), ((), ())), preferred_element_type=f32)

    x = x + attn_acc + bo[...]

    # ---- feed-forward branch: x + FF(LN2(x)) -------------------------------
    h2 = layer_norm(x, ln2_g[...], ln2_b[...]).astype(bf16)
    ff = mm(h2, w1[...]) + b1[...]
    # exact GELU (erf form, matches nn.GELU default), kept in f32 on the VPU/EUP
    ff = 0.5 * ff * (1.0 + jax.lax.erf(ff * (1.0 / math.sqrt(2.0))))
    ff = mm(ff.astype(bf16), w2[...]) + b2[...]
    x = x + ff

    o_ref[0] = x.astype(o_ref.dtype)


# ----------------------------------------------------------------------------
# Wrapper
# ----------------------------------------------------------------------------
def _full_spec(a):
    zero_idx = (0,) * a.ndim
    return pl.BlockSpec(a.shape, lambda b: zero_idx)   # whole array resident every grid step


def transformer_encoder_layer(x, kargs, *, num_heads, head_dim):
    B, S, H = x.shape
    I = kargs["w1"].shape[1]

    weight_args = [
        kargs["ln1_g"], kargs["ln1_b"],
        kargs["wqkv"], kargs["bqkv"],
        kargs["wo"], kargs["bo"],
        kargs["ln2_g"], kargs["ln2_b"],
        kargs["w1"], kargs["b1"], kargs["w2"], kargs["b2"],
        kargs["cos"], kargs["sin"],
    ]

    in_specs = [pl.BlockSpec((1, S, H), lambda b: (b, 0, 0))] + [
        _full_spec(a) for a in weight_args
    ]

    kernel = functools.partial(
        _encoder_layer_kernel, num_heads=num_heads, head_dim=head_dim
    )

    # Advisory cost estimate (total over the whole call).
    flops = B * (8 * S * H * H + 4 * S * S * H + 4 * S * H * I)
    transcendentals = B * (num_heads * S * S + S * I + 2 * S)
    bytes_accessed = (
        2 * B * S * H * 4                                   # x in + out (f32)
        + (3 * H * H + H * H + 2 * H * I) * 2               # bf16 weights
        + (3 * H + 2 * H + I + 4 * H) * 4                   # biases + LN params (f32)
        + 2 * S * H * 4                                     # rope tables (f32)
    )

    return pl.pallas_call(
        kernel,
        out_shape=jax.ShapeDtypeStruct((B, S, H), x.dtype),
        grid_spec=pltpu.PrefetchScalarGridSpec(
            num_scalar_prefetch=0,
            grid=(B,),
            in_specs=in_specs,
            out_specs=pl.BlockSpec((1, S, H), lambda b: (b, 0, 0)),
        ),
        compiler_params=pltpu.CompilerParams(
            dimension_semantics=("parallel",),              # shard batch over v7x's 2 TCs
            vmem_limit_bytes=48 * 1024 * 1024,
        ),
        cost_estimate=pl.CostEstimate(
            flops=flops, transcendentals=transcendentals, bytes_accessed=bytes_accessed),
    )(x, *weight_args)


# ----------------------------------------------------------------------------
# Parameter construction (deterministic), kernel-arg preparation, pure-JAX reference
# ----------------------------------------------------------------------------
def make_rotary_tables(seq_len, head_dim):
    # matches get_rotary_embedding: repeat-interleaved sin/cos over head_dim
    inv_freq = 1.0 / (10000.0 ** (jnp.arange(0, head_dim, 2, dtype=jnp.float32) / head_dim))
    pos = jnp.arange(seq_len, dtype=jnp.float32)
    sinusoid = pos[:, None] * inv_freq[None, :]
    sin = jnp.repeat(jnp.sin(sinusoid), 2, axis=-1)         # (S, head_dim)
    cos = jnp.repeat(jnp.cos(sinusoid), 2, axis=-1)
    return cos, sin


def make_params(key, hidden, intermediate):
    ks = jax.random.split(key, 10)
    std = 0.02
    return {
        "ln1_g": jnp.ones((1, hidden), jnp.float32),
        "ln1_b": jnp.zeros((1, hidden), jnp.float32),
        "wq": std * jax.random.normal(ks[0], (hidden, hidden), jnp.float32),
        "bq": std * jax.random.normal(ks[1], (1, hidden), jnp.float32),
        "wk": std * jax.random.normal(ks[2], (hidden, hidden), jnp.float32),
        "bk": std * jax.random.normal(ks[3], (1, hidden), jnp.float32),
        "wv": std * jax.random.normal(ks[4], (hidden, hidden), jnp.float32),
        "bv": std * jax.random.normal(ks[5], (1, hidden), jnp.float32),
        "wo": std * jax.random.normal(ks[6], (hidden, hidden), jnp.float32),
        "bo": jnp.zeros((1, hidden), jnp.float32),
        "ln2_g": jnp.ones((1, hidden), jnp.float32),
        "ln2_b": jnp.zeros((1, hidden), jnp.float32),
        "w1": std * jax.random.normal(ks[7], (hidden, intermediate), jnp.float32),
        "b1": jnp.zeros((1, intermediate), jnp.float32),
        "w2": std * jax.random.normal(ks[8], (intermediate, hidden), jnp.float32),
        "b2": jnp.zeros((1, hidden), jnp.float32),
    }


def prepare_kernel_args(p, seq_len, num_heads, head_dim):
    """Fuse QKV, fold the attention scale into Q, cast MXU weights to bf16, build RoPE tables."""
    bf16 = jnp.bfloat16
    scale = 1.0 / math.sqrt(head_dim)
    half = head_dim // 2

    wqkv = jnp.concatenate([p["wq"] * scale, p["wk"], p["wv"]], axis=1).astype(bf16)
    bqkv = jnp.concatenate([p["bq"] * scale, p["bk"], p["bv"]], axis=1)   # f32

    cos, sin = make_rotary_tables(seq_len, head_dim)                      # (S, head_dim)
    sin_signed = jnp.concatenate([-sin[:, :half], sin[:, half:]], axis=-1)
    cos_full = jnp.tile(cos, (1, num_heads))                              # (S, H)
    sin_full = jnp.tile(sin_signed, (1, num_heads))                       # (S, H)

    return {
        "ln1_g": p["ln1_g"], "ln1_b": p["ln1_b"],
        "wqkv": wqkv, "bqkv": bqkv,
        "wo": p["wo"].astype(bf16), "bo": p["bo"],
        "ln2_g": p["ln2_g"], "ln2_b": p["ln2_b"],
        "w1": p["w1"].astype(bf16), "b1": p["b1"],
        "w2": p["w2"].astype(bf16), "b2": p["b2"],
        "cos": cos_full, "sin": sin_full,
    }


def reference(x, p, *, num_heads, head_dim):
    """Pure-JAX reference following the PyTorch module, with bf16 MXU operands / f32 accumulation
    to mirror the kernel's matmul numerics."""
    bf16 = jnp.bfloat16

    def mmr(a, w):
        return jax.lax.dot_general(
            a.astype(bf16), w.astype(bf16),
            (((a.ndim - 1,), (0,)), ((), ())),
            preferred_element_type=jnp.float32)

    def ln(v, g, b, eps=1e-5):
        mu = v.mean(-1, keepdims=True)
        var = ((v - mu) ** 2).mean(-1, keepdims=True)
        return (v - mu) / jnp.sqrt(var + eps) * g + b

    cos, sin = make_rotary_tables(x.shape[1], head_dim)
    half = head_dim // 2

    def rope(t):                      # t: (B, S, head_dim)
        t1, t2 = t[..., :half], t[..., half:]
        return t * cos + jnp.concatenate([-t2, t1], axis=-1) * sin

    h1 = ln(x, p["ln1_g"], p["ln1_b"])
    q = mmr(h1, p["wq"]) + p["bq"]
    k = mmr(h1, p["wk"]) + p["bk"]
    v = mmr(h1, p["wv"]) + p["bv"]
    outs = []
    for h in range(num_heads):
        sl = slice(h * head_dim, (h + 1) * head_dim)
        qh, kh, vh = rope(q[..., sl]), rope(k[..., sl]), v[..., sl]
        s = jnp.einsum("bsd,btd->bst", qh.astype(bf16), kh.astype(bf16),
                       preferred_element_type=jnp.float32) / math.sqrt(head_dim)
        w = jax.nn.softmax(s, axis=-1)
        outs.append(jnp.einsum("bst,btd->bsd", w.astype(bf16), vh.astype(bf16),
                               preferred_element_type=jnp.float32))
    attn = jnp.concatenate(outs, axis=-1)
    attn = mmr(attn, p["wo"]) + p["bo"]
    x = x + attn
    h2 = ln(x, p["ln2_g"], p["ln2_b"])
    ff = mmr(h2, p["w1"]) + p["b1"]
    ff = 0.5 * ff * (1.0 + jax.lax.erf(ff / math.sqrt(2.0)))
    ff = mmr(ff, p["w2"]) + p["b2"]
    return x + ff


if __name__ == "__main__":
    B, S, H = 2, 8, 32
    NUM_HEADS = 4
    HEAD_DIM = H // NUM_HEADS
    INTERMEDIATE = 64

    key = jax.random.PRNGKey(0)
    k_x, k_p = jax.random.split(key)
    x = jax.random.normal(k_x, (B, S, H), jnp.float32)
    params = make_params(k_p, H, INTERMEDIATE)
    kargs = prepare_kernel_args(params, S, NUM_HEADS, HEAD_DIM)

    out = transformer_encoder_layer(x, kargs, num_heads=NUM_HEADS, head_dim=HEAD_DIM)
    out = jax.block_until_ready(out)

    ref = reference(x, params, num_heads=NUM_HEADS, head_dim=HEAD_DIM)
    assert out.shape == (B, S, H)
    max_err = float(jnp.max(jnp.abs(out - ref)))
    assert jnp.allclose(out, ref, rtol=2e-3, atol=2e-3), max_err
    print("KERNEL_OK")
</pallas_src>

<mosaic_0001>
module attributes {stable_mosaic.version = 11 : i64} {
  func.func @_encoder_layer_kernel(%arg0: i32, %arg1: memref<1x8x32xf32, #tpu.memory_space<vmem>>, %arg2: memref<1x32xf32, #tpu.memory_space<vmem>>, %arg3: memref<1x32xf32, #tpu.memory_space<vmem>>, %arg4: memref<32x96xbf16, #tpu.memory_space<vmem>>, %arg5: memref<1x96xf32, #tpu.memory_space<vmem>>, %arg6: memref<32x32xbf16, #tpu.memory_space<vmem>>, %arg7: memref<1x32xf32, #tpu.memory_space<vmem>>, %arg8: memref<1x32xf32, #tpu.memory_space<vmem>>, %arg9: memref<1x32xf32, #tpu.memory_space<vmem>>, %arg10: memref<32x64xbf16, #tpu.memory_space<vmem>>, %arg11: memref<1x64xf32, #tpu.memory_space<vmem>>, %arg12: memref<64x32xbf16, #tpu.memory_space<vmem>>, %arg13: memref<1x32xf32, #tpu.memory_space<vmem>>, %arg14: memref<8x32xf32, #tpu.memory_space<vmem>>, %arg15: memref<8x32xf32, #tpu.memory_space<vmem>>, %arg16: memref<1x8x32xf32, #tpu.memory_space<vmem>>) attributes {dimension_semantics = [#tpu.dimension_semantics<parallel>], iteration_bounds = array<i64: 2>, scalar_prefetch = 0 : i64, scratch_operands = 0 : i64, tpu.core_type = #tpu.core_type<tc>, window_params = [{transform_indices = @transform_0, window_bounds = array<i64: 1, 8, 32>}, {pipeline_mode = #tpu.pipeline_mode<synchronous>, transform_indices = @transform_1, window_bounds = array<i64: 1, 32>}, {pipeline_mode = #tpu.pipeline_mode<synchronous>, transform_indices = @transform_2, window_bounds = array<i64: 1, 32>}, {pipeline_mode = #tpu.pipeline_mode<synchronous>, transform_indices = @transform_3, window_bounds = array<i64: 32, 96>}, {pipeline_mode = #tpu.pipeline_mode<synchronous>, transform_indices = @transform_4, window_bounds = array<i64: 1, 96>}, {pipeline_mode = #tpu.pipeline_mode<synchronous>, transform_indices = @transform_5, window_bounds = array<i64: 32, 32>}, {pipeline_mode = #tpu.pipeline_mode<synchronous>, transform_indices = @transform_6, window_bounds = array<i64: 1, 32>}, {pipeline_mode = #tpu.pipeline_mode<synchronous>, transform_indices = @transform_7, window_bounds = array<i64: 1, 32>}, {pipeline_mode = #tpu.pipeline_mode<synchronous>, transform_indices = @transform_8, window_bounds = array<i64: 1, 32>}, {pipeline_mode = #tpu.pipeline_mode<synchronous>, transform_indices = @transform_9, window_bounds = array<i64: 32, 64>}, {pipeline_mode = #tpu.pipeline_mode<synchronous>, transform_indices = @transform_10, window_bounds = array<i64: 1, 64>}, {pipeline_mode = #tpu.pipeline_mode<synchronous>, transform_indices = @transform_11, window_bounds = array<i64: 64, 32>}, {pipeline_mode = #tpu.pipeline_mode<synchronous>, transform_indices = @transform_12, window_bounds = array<i64: 1, 32>}, {pipeline_mode = #tpu.pipeline_mode<synchronous>, transform_indices = @transform_13, window_bounds = array<i64: 8, 32>}, {pipeline_mode = #tpu.pipeline_mode<synchronous>, transform_indices = @transform_14, window_bounds = array<i64: 8, 32>}, {transform_indices = @transform_15, window_bounds = array<i64: 1, 8, 32>}]} {
    %c0 = arith.constant 0 : index
    %c0_0 = arith.constant 0 : index
    %c0_1 = arith.constant 0 : index
    %0 = vector.load %arg1[%c0, %c0_0, %c0_1] : memref<1x8x32xf32, #tpu.memory_space<vmem>>, vector<1x8x32xf32>
    %1 = vector.shape_cast %0 : vector<1x8x32xf32> to vector<8x32xf32>
    %c0_2 = arith.constant 0 : index
    %c0_3 = arith.constant 0 : index
    %2 = vector.load %arg2[%c0_2, %c0_3] : memref<1x32xf32, #tpu.memory_space<vmem>>, vector<1x32xf32>
    %c0_4 = arith.constant 0 : index
    %c0_5 = arith.constant 0 : index
    %3 = vector.load %arg3[%c0_4, %c0_5] : memref<1x32xf32, #tpu.memory_space<vmem>>, vector<1x32xf32>
    %cst = arith.constant dense<0.000000e+00> : vector<8xf32>
    %4 = vector.multi_reduction <add>, %1, %cst [1] : vector<8x32xf32> to vector<8xf32>
    %5 = vector.shape_cast %4 : vector<8xf32> to vector<8x1xf32>
    %cst_6 = arith.constant 3.200000e+01 : f32
    %6 = vector.broadcast %cst_6 : f32 to vector<8x1xf32>
    %7 = arith.divf %5, %6 : vector<8x1xf32>
    %8 = vector.broadcast %7 : vector<8x1xf32> to vector<8x32xf32>
    %9 = arith.subf %1, %8 : vector<8x32xf32>
    %10 = vector.broadcast %7 : vector<8x1xf32> to vector<8x32xf32>
    %11 = arith.subf %1, %10 : vector<8x32xf32>
    %12 = arith.mulf %9, %11 : vector<8x32xf32>
    %cst_7 = arith.constant dense<0.000000e+00> : vector<8xf32>
    %13 = vector.multi_reduction <add>, %12, %cst_7 [1] : vector<8x32xf32> to vector<8xf32>
    %14 = vector.shape_cast %13 : vector<8xf32> to vector<8x1xf32>
    %cst_8 = arith.constant 3.200000e+01 : f32
    %15 = vector.broadcast %cst_8 : f32 to vector<8x1xf32>
    %16 = arith.divf %14, %15 : vector<8x1xf32>
    %17 = vector.broadcast %7 : vector<8x1xf32> to vector<8x32xf32>
    %18 = arith.subf %1, %17 : vector<8x32xf32>
    %cst_9 = arith.constant 9.99999974E-6 : f32
    %19 = vector.broadcast %cst_9 : f32 to vector<8x1xf32>
    %20 = arith.addf %16, %19 : vector<8x1xf32>
    %21 = math.rsqrt %20 : vector<8x1xf32>
    %22 = vector.broadcast %21 : vector<8x1xf32> to vector<8x32xf32>
    %23 = arith.mulf %18, %22 : vector<8x32xf32>
    %24 = vector.broadcast %2 : vector<1x32xf32> to vector<8x32xf32>
    %25 = arith.mulf %23, %24 : vector<8x32xf32>
    %26 = vector.broadcast %3 : vector<1x32xf32> to vector<8x32xf32>
    %27 = arith.addf %25, %26 : vector<8x32xf32>
    %28 = arith.truncf %27 : vector<8x32xf32> to vector<8x32xbf16>
    %c0_10 = arith.constant 0 : index
    %c0_11 = arith.constant 0 : index
    %29 = vector.load %arg4[%c0_10, %c0_11] : memref<32x96xbf16, #tpu.memory_space<vmem>>, vector<32x96xbf16>
    %cst_12 = arith.constant dense<0.000000e+00> : vector<8x96xf32>
    %30 = tpu.matmul %28, %29, %cst_12 {dimension_numbers = #tpu.dot_dimension_numbers<[1], [0], [0], [1], [0, 0, 1, 1], [], []>} : vector<8x32xbf16>, vector<32x96xbf16>, vector<8x96xf32> -> vector<8x96xf32>
    %c0_13 = arith.constant 0 : index
    %c0_14 = arith.constant 0 : index
    %31 = vector.load %arg5[%c0_13, %c0_14] : memref<1x96xf32, #tpu.memory_space<vmem>>, vector<1x96xf32>
    %32 = vector.broadcast %31 : vector<1x96xf32> to vector<8x96xf32>
    %33 = arith.addf %30, %32 : vector<8x96xf32>
    %34 = vector.extract_strided_slice %33 {offsets = [0, 0], sizes = [8, 32], strides = [1, 1]} : vector<8x96xf32> to vector<8x32xf32>
    %35 = vector.extract_strided_slice %33 {offsets = [0, 32], sizes = [8, 32], strides = [1, 1]} : vector<8x96xf32> to vector<8x32xf32>
    %36 = vector.extract_strided_slice %33 {offsets = [0, 64], sizes = [8, 32], strides = [1, 1]} : vector<8x96xf32> to vector<8x32xf32>
    %c0_15 = arith.constant 0 : index
    %c0_16 = arith.constant 0 : index
    %37 = vector.load %arg14[%c0_15, %c0_16] : memref<8x32xf32, #tpu.memory_space<vmem>>, vector<8x32xf32>
    %c0_17 = arith.constant 0 : index
    %c0_18 = arith.constant 0 : index
    %38 = vector.load %arg15[%c0_17, %c0_18] : memref<8x32xf32, #tpu.memory_space<vmem>>, vector<8x32xf32>
    %39 = vector.extract_strided_slice %34 {offsets = [0, 4], sizes = [8, 4], strides = [1, 1]} : vector<8x32xf32> to vector<8x4xf32>
    %40 = vector.extract_strided_slice %34 {offsets = [0, 0], sizes = [8, 4], strides = [1, 1]} : vector<8x32xf32> to vector<8x4xf32>
    %41 = vector.extract_strided_slice %34 {offsets = [0, 12], sizes = [8, 4], strides = [1, 1]} : vector<8x32xf32> to vector<8x4xf32>
    %42 = vector.extract_strided_slice %34 {offsets = [0, 8], sizes = [8, 4], strides = [1, 1]} : vector<8x32xf32> to vector<8x4xf32>
    %43 = vector.extract_strided_slice %34 {offsets = [0, 20], sizes = [8, 4], strides = [1, 1]} : vector<8x32xf32> to vector<8x4xf32>
    %44 = vector.extract_strided_slice %34 {offsets = [0, 16], sizes = [8, 4], strides = [1, 1]} : vector<8x32xf32> to vector<8x4xf32>
    %45 = vector.extract_strided_slice %34 {offsets = [0, 28], sizes = [8, 4], strides = [1, 1]} : vector<8x32xf32> to vector<8x4xf32>
    %46 = vector.extract_strided_slice %34 {offsets = [0, 24], sizes = [8, 4], strides = [1, 1]} : vector<8x32xf32> to vector<8x4xf32>
    %47 = tpu.concatenate %39, %40, %41, %42, %43, %44, %45, %46 in 1 : vector<8x4xf32>, vector<8x4xf32>, vector<8x4xf32>, vector<8x4xf32>, vector<8x4xf32>, vector<8x4xf32>, vector<8x4xf32>, vector<8x4xf32> -> vector<8x32xf32>
    %48 = arith.mulf %34, %37 : vector<8x32xf32>
    %49 = arith.mulf %47, %38 : vector<8x32xf32>
    %50 = arith.addf %48, %49 : vector<8x32xf32>
    %51 = arith.truncf %50 : vector<8x32xf32> to vector<8x32xbf16>
    %52 = vector.extract_strided_slice %35 {offsets = [0, 4], sizes = [8, 4], strides = [1, 1]} : vector<8x32xf32> to vector<8x4xf32>
    %53 = vector.extract_strided_slice %35 {offsets = [0, 0], sizes = [8, 4], strides = [1, 1]} : vector<8x32xf32> to vector<8x4xf32>
    %54 = vector.extract_strided_slice %35 {offsets = [0, 12], sizes = [8, 4], strides = [1, 1]} : vector<8x32xf32> to vector<8x4xf32>
    %55 = vector.extract_strided_slice %35 {offsets = [0, 8], sizes = [8, 4], strides = [1, 1]} : vector<8x32xf32> to vector<8x4xf32>
    %56 = vector.extract_strided_slice %35 {offsets = [0, 20], sizes = [8, 4], strides = [1, 1]} : vector<8x32xf32> to vector<8x4xf32>
    %57 = vector.extract_strided_slice %35 {offsets = [0, 16], sizes = [8, 4], strides = [1, 1]} : vector<8x32xf32> to vector<8x4xf32>
    %58 = vector.extract_strided_slice %35 {offsets = [0, 28], sizes = [8, 4], strides = [1, 1]} : vector<8x32xf32> to vector<8x4xf32>
    %59 = vector.extract_strided_slice %35 {offsets = [0, 24], sizes = [8, 4], strides = [1, 1]} : vector<8x32xf32> to vector<8x4xf32>
    %60 = tpu.concatenate %52, %53, %54, %55, %56, %57, %58, %59 in 1 : vector<8x4xf32>, vector<8x4xf32>, vector<8x4xf32>, vector<8x4xf32>, vector<8x4xf32>, vector<8x4xf32>, vector<8x4xf32>, vector<8x4xf32> -> vector<8x32xf32>
    %61 = arith.mulf %35, %37 : vector<8x32xf32>
    %62 = arith.mulf %60, %38 : vector<8x32xf32>
    %63 = arith.addf %61, %62 : vector<8x32xf32>
    %64 = arith.truncf %63 : vector<8x32xf32> to vector<8x32xbf16>
    %65 = arith.truncf %36 : vector<8x32xf32> to vector<8x32xbf16>
    %c0_19 = arith.constant 0 : index
    %c0_20 = arith.constant 0 : index
    %66 = vector.load %arg6[%c0_19, %c0_20] : memref<32x32xbf16, #tpu.memory_space<vmem>>, vector<32x32xbf16>
    %cst_21 = arith.constant 0.000000e+00 : f32
    %67 = vector.broadcast %cst_21 : f32 to vector<8x32xf32>
    %68 = vector.extract_strided_slice %51 {offsets = [0, 0], sizes = [8, 8], strides = [1, 1]} : vector<8x32xbf16> to vector<8x8xbf16>
    %69 = vector.extract_strided_slice %64 {offsets = [0, 0], sizes = [8, 8], strides = [1, 1]} : vector<8x32xbf16> to vector<8x8xbf16>
    %70 = vector.extract_strided_slice %65 {offsets = [0, 0], sizes = [8, 8], strides = [1, 1]} : vector<8x32xbf16> to vector<8x8xbf16>
    %cst_22 = arith.constant dense<0.000000e+00> : vector<8x8xf32>
    %71 = tpu.matmul %68, %69, %cst_22 {dimension_numbers = #tpu.dot_dimension_numbers<[1], [1], [0], [0], [0, 0, 1, 0], [], []>} : vector<8x8xbf16>, vector<8x8xbf16>, vector<8x8xf32> -> vector<8x8xf32>
    %cst_23 = arith.constant dense<0xFF800000> : vector<8xf32>
    %72 = vector.multi_reduction <maximumf>, %71, %cst_23 [1] : vector<8x8xf32> to vector<8xf32>
    %73 = vector.shape_cast %72 : vector<8xf32> to vector<8x1xf32>
    %74 = vector.broadcast %73 : vector<8x1xf32> to vector<8x8xf32>
    %75 = arith.subf %71, %74 : vector<8x8xf32>
    %76 = math.exp %75 : vector<8x8xf32>
    %cst_24 = arith.constant dense<0.000000e+00> : vector<8xf32>
    %77 = vector.multi_reduction <add>, %76, %cst_24 [1] : vector<8x8xf32> to vector<8xf32>
    %78 = vector.shape_cast %77 : vector<8xf32> to vector<8x1xf32>
    %79 = tpu.reciprocal %78 {approx = true} : vector<8x1xf32> -> vector<8x1xf32>
    %80 = vector.broadcast %79 : vector<8x1xf32> to vector<8x8xf32>
    %81 = arith.mulf %76, %80 : vector<8x8xf32>
    %82 = arith.truncf %81 : vector<8x8xf32> to vector<8x8xbf16>
    %cst_25 = arith.constant dense<0.000000e+00> : vector<8x8xf32>
    %83 = tpu.matmul %82, %70, %cst_25 {dimension_numbers = #tpu.dot_dimension_numbers<[1], [0], [0], [1], [0, 0, 1, 1], [], []>} : vector<8x8xbf16>, vector<8x8xbf16>, vector<8x8xf32> -> vector<8x8xf32>
    %84 = arith.truncf %83 : vector<8x8xf32> to vector<8x8xbf16>
    %85 = vector.extract_strided_slice %66 {offsets = [0, 0], sizes = [8, 32], strides = [1, 1]} : vector<32x32xbf16> to vector<8x32xbf16>
    %cst_26 = arith.constant dense<0.000000e+00> : vector<8x32xf32>
    %86 = tpu.matmul %84, %85, %cst_26 {dimension_numbers = #tpu.dot_dimension_numbers<[1], [0], [0], [1], [0, 0, 1, 1], [], []>} : vector<8x8xbf16>, vector<8x32xbf16>, vector<8x32xf32> -> vector<8x32xf32>
    %87 = arith.addf %67, %86 : vector<8x32xf32>
    %88 = vector.extract_strided_slice %51 {offsets = [0, 8], sizes = [8, 8], strides = [1, 1]} : vector<8x32xbf16> to vector<8x8xbf16>
    %89 = vector.extract_strided_slice %64 {offsets = [0, 8], sizes = [8, 8], strides = [1, 1]} : vector<8x32xbf16> to vector<8x8xbf16>
    %90 = vector.extract_strided_slice %65 {offsets = [0, 8], sizes = [8, 8], strides = [1, 1]} : vector<8x32xbf16> to vector<8x8xbf16>
    %cst_27 = arith.constant dense<0.000000e+00> : vector<8x8xf32>
    %91 = tpu.matmul %88, %89, %cst_27 {dimension_numbers = #tpu.dot_dimension_numbers<[1], [1], [0], [0], [0, 0, 1, 0], [], []>} : vector<8x8xbf16>, vector<8x8xbf16>, vector<8x8xf32> -> vector<8x8xf32>
    %cst_28 = arith.constant dense<0xFF800000> : vector<8xf32>
    %92 = vector.multi_reduction <maximumf>, %91, %cst_28 [1] : vector<8x8xf32> to vector<8xf32>
    %93 = vector.shape_cast %92 : vector<8xf32> to vector<8x1xf32>
    %94 = vector.broadcast %93 : vector<8x1xf32> to vector<8x8xf32>
    %95 = arith.subf %91, %94 : vector<8x8xf32>
    %96 = math.exp %95 : vector<8x8xf32>
    %cst_29 = arith.constant dense<0.000000e+00> : vector<8xf32>
    %97 = vector.multi_reduction <add>, %96, %cst_29 [1] : vector<8x8xf32> to vector<8xf32>
    %98 = vector.shape_cast %97 : vector<8xf32> to vector<8x1xf32>
    %99 = tpu.reciprocal %98 {approx = true} : vector<8x1xf32> -> vector<8x1xf32>
    %100 = vector.broadcast %99 : vector<8x1xf32> to vector<8x8xf32>
    %101 = arith.mulf %96, %100 : vector<8x8xf32>
    %102 = arith.truncf %101 : vector<8x8xf32> to vector<8x8xbf16>
    %cst_30 = arith.constant dense<0.000000e+00> : vector<8x8xf32>
    %103 = tpu.matmul %102, %90, %cst_30 {dimension_numbers = #tpu.dot_dimension_numbers<[1], [0], [0], [1], [0, 0, 1, 1], [], []>} : vector<8x8xbf16>, vector<8x8xbf16>, vector<8x8xf32> -> vector<8x8xf32>
    %104 = arith.truncf %103 : vector<8x8xf32> to vector<8x8xbf16>
    %105 = vector.extract_strided_slice %66 {offsets = [8, 0], sizes = [8, 32], strides = [1, 1]} : vector<32x32xbf16> to vector<8x32xbf16>
    %cst_31 = arith.constant dense<0.000000e+00> : vector<8x32xf32>
    %106 = tpu.matmul %104, %105, %cst_31 {dimension_numbers = #tpu.dot_dimension_numbers<[1], [0], [0], [1], [0, 0, 1, 1], [], []>} : vector<8x8xbf16>, vector<8x32xbf16>, vector<8x32xf32> -> vector<8x32xf32>
    %107 = arith.addf %87, %106 : vector<8x32xf32>
    %108 = vector.extract_strided_slice %51 {offsets = [0, 16], sizes = [8, 8], strides = [1, 1]} : vector<8x32xbf16> to vector<8x8xbf16>
    %109 = vector.extract_strided_slice %64 {offsets = [0, 16], sizes = [8, 8], strides = [1, 1]} : vector<8x32xbf16> to vector<8x8xbf16>
    %110 = vector.extract_strided_slice %65 {offsets = [0, 16], sizes = [8, 8], strides = [1, 1]} : vector<8x32xbf16> to vector<8x8xbf16>
    %cst_32 = arith.constant dense<0.000000e+00> : vector<8x8xf32>
    %111 = tpu.matmul %108, %109, %cst_32 {dimension_numbers = #tpu.dot_dimension_numbers<[1], [1], [0], [0], [0, 0, 1, 0], [], []>} : vector<8x8xbf16>, vector<8x8xbf16>, vector<8x8xf32> -> vector<8x8xf32>
    %cst_33 = arith.constant dense<0xFF800000> : vector<8xf32>
    %112 = vector.multi_reduction <maximumf>, %111, %cst_33 [1] : vector<8x8xf32> to vector<8xf32>
    %113 = vector.shape_cast %112 : vector<8xf32> to vector<8x1xf32>
    %114 = vector.broadcast %113 : vector<8x1xf32> to vector<8x8xf32>
    %115 = arith.subf %111, %114 : vector<8x8xf32>
    %116 = math.exp %115 : vector<8x8xf32>
    %cst_34 = arith.constant dense<0.000000e+00> : vector<8xf32>
    %117 = vector.multi_reduction <add>, %116, %cst_34 [1] : vector<8x8xf32> to vector<8xf32>
    %118 = vector.shape_cast %117 : vector<8xf32> to vector<8x1xf32>
    %119 = tpu.reciprocal %118 {approx = true} : vector<8x1xf32> -> vector<8x1xf32>
    %120 = vector.broadcast %119 : vector<8x1xf32> to vector<8x8xf32>
    %121 = arith.mulf %116, %120 : vector<8x8xf32>
    %122 = arith.truncf %121 : vector<8x8xf32> to vector<8x8xbf16>
    %cst_35 = arith.constant dense<0.000000e+00> : vector<8x8xf32>
    %123 = tpu.matmul %122, %110, %cst_35 {dimension_numbers = #tpu.dot_dimension_numbers<[1], [0], [0], [1], [0, 0, 1, 1], [], []>} : vector<8x8xbf16>, vector<8x8xbf16>, vector<8x8xf32> -> vector<8x8xf32>
    %124 = arith.truncf %123 : vector<8x8xf32> to vector<8x8xbf16>
    %125 = vector.extract_strided_slice %66 {offsets = [16, 0], sizes = [8, 32], strides = [1, 1]} : vector<32x32xbf16> to vector<8x32xbf16>
    %cst_36 = arith.constant dense<0.000000e+00> : vector<8x32xf32>
    %126 = tpu.matmul %124, %125, %cst_36 {dimension_numbers = #tpu.dot_dimension_numbers<[1], [0], [0], [1], [0, 0, 1, 1], [], []>} : vector<8x8xbf16>, vector<8x32xbf16>, vector<8x32xf32> -> vector<8x32xf32>
    %127 = arith.addf %107, %126 : vector<8x32xf32>
    %128 = vector.extract_strided_slice %51 {offsets = [0, 24], sizes = [8, 8], strides = [1, 1]} : vector<8x32xbf16> to vector<8x8xbf16>
    %129 = vector.extract_strided_slice %64 {offsets = [0, 24], sizes = [8, 8], strides = [1, 1]} : vector<8x32xbf16> to vector<8x8xbf16>
    %130 = vector.extract_strided_slice %65 {offsets = [0, 24], sizes = [8, 8], strides = [1, 1]} : vector<8x32xbf16> to vector<8x8xbf16>
    %cst_37 = arith.constant dense<0.000000e+00> : vector<8x8xf32>
    %131 = tpu.matmul %128, %129, %cst_37 {dimension_numbers = #tpu.dot_dimension_numbers<[1], [1], [0], [0], [0, 0, 1, 0], [], []>} : vector<8x8xbf16>, vector<8x8xbf16>, vector<8x8xf32> -> vector<8x8xf32>
    %cst_38 = arith.constant dense<0xFF800000> : vector<8xf32>
    %132 = vector.multi_reduction <maximumf>, %131, %cst_38 [1] : vector<8x8xf32> to vector<8xf32>
    %133 = vector.shape_cast %132 : vector<8xf32> to vector<8x1xf32>
    %134 = vector.broadcast %133 : vector<8x1xf32> to vector<8x8xf32>
    %135 = arith.subf %131, %134 : vector<8x8xf32>
    %136 = math.exp %135 : vector<8x8xf32>
    %cst_39 = arith.constant dense<0.000000e+00> : vector<8xf32>
    %137 = vector.multi_reduction <add>, %136, %cst_39 [1] : vector<8x8xf32> to vector<8xf32>
    %138 = vector.shape_cast %137 : vector<8xf32> to vector<8x1xf32>
    %139 = tpu.reciprocal %138 {approx = true} : vector<8x1xf32> -> vector<8x1xf32>
    %140 = vector.broadcast %139 : vector<8x1xf32> to vector<8x8xf32>
    %141 = arith.mulf %136, %140 : vector<8x8xf32>
    %142 = arith.truncf %141 : vector<8x8xf32> to vector<8x8xbf16>
    %cst_40 = arith.constant dense<0.000000e+00> : vector<8x8xf32>
    %143 = tpu.matmul %142, %130, %cst_40 {dimension_numbers = #tpu.dot_dimension_numbers<[1], [0], [0], [1], [0, 0, 1, 1], [], []>} : vector<8x8xbf16>, vector<8x8xbf16>, vector<8x8xf32> -> vector<8x8xf32>
    %144 = arith.truncf %143 : vector<8x8xf32> to vector<8x8xbf16>
    %145 = vector.extract_strided_slice %66 {offsets = [24, 0], sizes = [8, 32], strides = [1, 1]} : vector<32x32xbf16> to vector<8x32xbf16>
    %cst_41 = arith.constant dense<0.000000e+00> : vector<8x32xf32>
    %146 = tpu.matmul %144, %145, %cst_41 {dimension_numbers = #tpu.dot_dimension_numbers<[1], [0], [0], [1], [0, 0, 1, 1], [], []>} : vector<8x8xbf16>, vector<8x32xbf16>, vector<8x32xf32> -> vector<8x32xf32>
    %147 = arith.addf %127, %146 : vector<8x32xf32>
    %148 = arith.addf %1, %147 : vector<8x32xf32>
    %c0_42 = arith.constant 0 : index
    %c0_43 = arith.constant 0 : index
    %149 = vector.load %arg7[%c0_42, %c0_43] : memref<1x32xf32, #tpu.memory_space<vmem>>, vector<1x32xf32>
    %150 = vector.broadcast %149 : vector<1x32xf32> to vector<8x32xf32>
    %151 = arith.addf %148, %150 : vector<8x32xf32>
    %c0_44 = arith.constant 0 : index
    %c0_45 = arith.constant 0 : index
    %152 = vector.load %arg8[%c0_44, %c0_45] : memref<1x32xf32, #tpu.memory_space<vmem>>, vector<1x32xf32>
    %c0_46 = arith.constant 0 : index
    %c0_47 = arith.constant 0 : index
    %153 = vector.load %arg9[%c0_46, %c0_47] : memref<1x32xf32, #tpu.memory_space<vmem>>, vector<1x32xf32>
    %cst_48 = arith.constant dense<0.000000e+00> : vector<8xf32>
    %154 = vector.multi_reduction <add>, %151, %cst_48 [1] : vector<8x32xf32> to vector<8xf32>
    %155 = vector.shape_cast %154 : vector<8xf32> to vector<8x1xf32>
    %cst_49 = arith.constant 3.200000e+01 : f32
    %156 = vector.broadcast %cst_49 : f32 to vector<8x1xf32>
    %157 = arith.divf %155, %156 : vector<8x1xf32>
    %158 = vector.broadcast %157 : vector<8x1xf32> to vector<8x32xf32>
    %159 = arith.subf %151, %158 : vector<8x32xf32>
    %160 = vector.broadcast %157 : vector<8x1xf32> to vector<8x32xf32>
    %161 = arith.subf %151, %160 : vector<8x32xf32>
    %162 = arith.mulf %159, %161 : vector<8x32xf32>
    %cst_50 = arith.constant dense<0.000000e+00> : vector<8xf32>
    %163 = vector.multi_reduction <add>, %162, %cst_50 [1] : vector<8x32xf32> to vector<8xf32>
    %164 = vector.shape_cast %163 : vector<8xf32> to vector<8x1xf32>
    %cst_51 = arith.constant 3.200000e+01 : f32
    %165 = vector.broadcast %cst_51 : f32 to vector<8x1xf32>
    %166 = arith.divf %164, %165 : vector<8x1xf32>
    %167 = vector.broadcast %157 : vector<8x1xf32> to vector<8x32xf32>
    %168 = arith.subf %151, %167 : vector<8x32xf32>
    %cst_52 = arith.constant 9.99999974E-6 : f32
    %169 = vector.broadcast %cst_52 : f32 to vector<8x1xf32>
    %170 = arith.addf %166, %169 : vector<8x1xf32>
    %171 = math.rsqrt %170 : vector<8x1xf32>
    %172 = vector.broadcast %171 : vector<8x1xf32> to vector<8x32xf32>
    %173 = arith.mulf %168, %172 : vector<8x32xf32>
    %174 = vector.broadcast %152 : vector<1x32xf32> to vector<8x32xf32>
    %175 = arith.mulf %173, %174 : vector<8x32xf32>
    %176 = vector.broadcast %153 : vector<1x32xf32> to vector<8x32xf32>
    %177 = arith.addf %175, %176 : vector<8x32xf32>
    %178 = arith.truncf %177 : vector<8x32xf32> to vector<8x32xbf16>
    %c0_53 = arith.constant 0 : index
    %c0_54 = arith.constant 0 : index
    %179 = vector.load %arg10[%c0_53, %c0_54] : memref<32x64xbf16, #tpu.memory_space<vmem>>, vector<32x64xbf16>
    %cst_55 = arith.constant dense<0.000000e+00> : vector<8x64xf32>
    %180 = tpu.matmul %178, %179, %cst_55 {dimension_numbers = #tpu.dot_dimension_numbers<[1], [0], [0], [1], [0, 0, 1, 1], [], []>} : vector<8x32xbf16>, vector<32x64xbf16>, vector<8x64xf32> -> vector<8x64xf32>
    %c0_56 = arith.constant 0 : index
    %c0_57 = arith.constant 0 : index
    %181 = vector.load %arg11[%c0_56, %c0_57] : memref<1x64xf32, #tpu.memory_space<vmem>>, vector<1x64xf32>
    %182 = vector.broadcast %181 : vector<1x64xf32> to vector<8x64xf32>
    %183 = arith.addf %180, %182 : vector<8x64xf32>
    %cst_58 = arith.constant 5.000000e-01 : f32
    %184 = vector.broadcast %cst_58 : f32 to vector<8x64xf32>
    %185 = arith.mulf %184, %183 : vector<8x64xf32>
    %cst_59 = arith.constant 0.707106769 : f32
    %186 = vector.broadcast %cst_59 : f32 to vector<8x64xf32>
    %187 = arith.mulf %183, %186 : vector<8x64xf32>
    %188 = math.erf %187 : vector<8x64xf32>
    %cst_60 = arith.constant 1.000000e+00 : f32
    %189 = vector.broadcast %cst_60 : f32 to vector<8x64xf32>
    %190 = arith.addf %189, %188 : vector<8x64xf32>
    %191 = arith.mulf %185, %190 : vector<8x64xf32>
    %192 = arith.truncf %191 : vector<8x64xf32> to vector<8x64xbf16>
    %c0_61 = arith.constant 0 : index
    %c0_62 = arith.constant 0 : index
    %193 = vector.load %arg12[%c0_61, %c0_62] : memref<64x32xbf16, #tpu.memory_space<vmem>>, vector<64x32xbf16>
    %cst_63 = arith.constant dense<0.000000e+00> : vector<8x32xf32>
    %194 = tpu.matmul %192, %193, %cst_63 {dimension_numbers = #tpu.dot_dimension_numbers<[1], [0], [0], [1], [0, 0, 1, 1], [], []>} : vector<8x64xbf16>, vector<64x32xbf16>, vector<8x32xf32> -> vector<8x32xf32>
    %c0_64 = arith.constant 0 : index
    %c0_65 = arith.constant 0 : index
    %195 = vector.load %arg13[%c0_64, %c0_65] : memref<1x32xf32, #tpu.memory_space<vmem>>, vector<1x32xf32>
    %196 = vector.broadcast %195 : vector<1x32xf32> to vector<8x32xf32>
    %197 = arith.addf %194, %196 : vector<8x32xf32>
    %198 = arith.addf %151, %197 : vector<8x32xf32>
    %c0_66 = arith.constant 0 : index
    %c0_67 = arith.constant 0 : index
    %c0_68 = arith.constant 0 : index
    %199 = vector.load %arg16[%c0_66, %c0_67, %c0_68] : memref<1x8x32xf32, #tpu.memory_space<vmem>>, vector<1x8x32xf32>
    %200 = vector.shape_cast %199 : vector<1x8x32xf32> to vector<8x32xf32>
    %201 = vector.shape_cast %198 : vector<8x32xf32> to vector<1x8x32xf32>
    tpu.vector_store %arg16[%c0_66, %c0_67, %c0_68], %201 {strides = array<i32>} : memref<1x8x32xf32, #tpu.memory_space<vmem>>, vector<1x8x32xf32>,
    return
  }
  func.func @transform_0(%arg0: i32) -> (i32, i32, i32) {
    %c0_i32 = arith.constant 0 : i32
    %c0_i32_0 = arith.constant 0 : i32
    %c0_i32_1 = arith.constant 0 : i32
    return %arg0, %c0_i32, %c0_i32_0 : i32, i32, i32
  }
  func.func @transform_1(%arg0: i32) -> (i32, i32) {
    %c0_i32 = arith.constant 0 : i32
    %c0_i32_0 = arith.constant 0 : i32
    %c0_i32_1 = arith.constant 0 : i32
    return %c0_i32, %c0_i32_0 : i32, i32
  }
  func.func @transform_2(%arg0: i32) -> (i32, i32) {
    %c0_i32 = arith.constant 0 : i32
    %c0_i32_0 = arith.constant 0 : i32
    %c0_i32_1 = arith.constant 0 : i32
    return %c0_i32, %c0_i32_0 : i32, i32
  }
  func.func @transform_3(%arg0: i32) -> (i32, i32) {
    %c0_i32 = arith.constant 0 : i32
    %c0_i32_0 = arith.constant 0 : i32
    %c0_i32_1 = arith.constant 0 : i32
    return %c0_i32, %c0_i32_0 : i32, i32
  }
  func.func @transform_4(%arg0: i32) -> (i32, i32) {
    %c0_i32 = arith.constant 0 : i32
    %c0_i32_0 = arith.constant 0 : i32
    %c0_i32_1 = arith.constant 0 : i32
    return %c0_i32, %c0_i32_0 : i32, i32
  }
  func.func @transform_5(%arg0: i32) -> (i32, i32) {
    %c0_i32 = arith.constant 0 : i32
    %c0_i32_0 = arith.constant 0 : i32
    %c0_i32_1 = arith.constant 0 : i32
    return %c0_i32, %c0_i32_0 : i32, i32
  }
  func.func @transform_6(%arg0: i32) -> (i32, i32) {
    %c0_i32 = arith.constant 0 : i32
    %c0_i32_0 = arith.constant 0 : i32
    %c0_i32_1 = arith.constant 0 : i32
    return %c0_i32, %c0_i32_0 : i32, i32
  }
  func.func @transform_7(%arg0: i32) -> (i32, i32) {
    %c0_i32 = arith.constant 0 : i32
    %c0_i32_0 = arith.constant 0 : i32
    %c0_i32_1 = arith.constant 0 : i32
    return %c0_i32, %c0_i32_0 : i32, i32
  }
  func.func @transform_8(%arg0: i32) -> (i32, i32) {
    %c0_i32 = arith.constant 0 : i32
    %c0_i32_0 = arith.constant 0 : i32
    %c0_i32_1 = arith.constant 0 : i32
    return %c0_i32, %c0_i32_0 : i32, i32
  }
  func.func @transform_9(%arg0: i32) -> (i32, i32) {
    %c0_i32 = arith.constant 0 : i32
    %c0_i32_0 = arith.constant 0 : i32
    %c0_i32_1 = arith.constant 0 : i32
    return %c0_i32, %c0_i32_0 : i32, i32
  }
  func.func @transform_10(%arg0: i32) -> (i32, i32) {
    %c0_i32 = arith.constant 0 : i32
    %c0_i32_0 = arith.constant 0 : i32
    %c0_i32_1 = arith.constant 0 : i32
    return %c0_i32, %c0_i32_0 : i32, i32
  }
  func.func @transform_11(%arg0: i32) -> (i32, i32) {
    %c0_i32 = arith.constant 0 : i32
    %c0_i32_0 = arith.constant 0 : i32
    %c0_i32_1 = arith.constant 0 : i32
    return %c0_i32, %c0_i32_0 : i32, i32
  }
  func.func @transform_12(%arg0: i32) -> (i32, i32) {
    %c0_i32 = arith.constant 0 : i32
    %c0_i32_0 = arith.constant 0 : i32
    %c0_i32_1 = arith.constant 0 : i32
    return %c0_i32, %c0_i32_0 : i32, i32
  }
  func.func @transform_13(%arg0: i32) -> (i32, i32) {
    %c0_i32 = arith.constant 0 : i32
    %c0_i32_0 = arith.constant 0 : i32
    %c0_i32_1 = arith.constant 0 : i32
    return %c0_i32, %c0_i32_0 : i32, i32
  }
  func.func @transform_14(%arg0: i32) -> (i32, i32) {
    %c0_i32 = arith.constant 0 : i32
    %c0_i32_0 = arith.constant 0 : i32
    %c0_i32_1 = arith.constant 0 : i32
    return %c0_i32, %c0_i32_0 : i32, i32
  }
  func.func @transform_15(%arg0: i32) -> (i32, i32, i32) {
    %c0_i32 = arith.constant 0 : i32
    %c0_i32_0 = arith.constant 0 : i32
    %c0_i32_1 = arith.constant 0 : i32
    return %arg0, %c0_i32, %c0_i32_0 : i32, i32, i32
  }
}

</mosaic_0001>

<bundles_post_ra>
// kernel: tpu_custom_call.1
= control target key start
LH: loop header
LB: loop body
LE: loop exit
PB: predicated region body
PF: predicated region fallthrough
CT: control target
= control target key end

     0   :  { %s2348_s0 = inlined_call_operand.vmem [shape: f32[2,8,32], index: 0, kind: input, shape index: {}]   ;;  %s2349_s1 = inlined_call_operand.hbm [shape: f32[1,32], index: 1, kind: input, shape index: {}]   ;;  %s2350_s2 = inlined_call_operand.hbm [shape: f32[1,32], index: 2, kind: input, shape index: {}]   ;;  %s2351_s3 = inlined_call_operand.vmem [shape: bf16[32,96], index: 3, kind: input, shape index: {}]   ;;  %s2352_s4 = inlined_call_operand.hbm [shape: f32[1,96], index: 4, kind: input, shape index: {}]   ;;  %s2353_s5 = inlined_call_operand.vmem [shape: bf16[32,32], index: 5, kind: input, shape index: {}]   ;;  %s2354_s6 = inlined_call_operand.hbm [shape: f32[1,32], index: 6, kind: input, shape index: {}]   ;;  %s2355_s7 = inlined_call_operand.hbm [shape: f32[1,32], index: 7, kind: input, shape index: {}]   ;;  %s2356_s8 = inlined_call_operand.hbm [shape: f32[1,32], index: 8, kind: input, shape index: {}]   ;;  %s2357_s9 = inlined_call_operand.hbm [shape: bf16[32,64], index: 9, kind: input, shape index: {}]   ;;  %s2358_s10 = inlined_call_operand.vmem [shape: f32[1,64], index: 10, kind: input, shape index: {}]   ;;  %s2359_s11 = inlined_call_operand.vmem [shape: bf16[64,32], index: 11, kind: input, shape index: {}]   ;;  %s2360_s12 = inlined_call_operand.vmem [shape: f32[1,32], index: 12, kind: input, shape index: {}]   ;;  %s2361_s13 = inlined_call_operand.vmem [shape: f32[8,32], index: 13, kind: input, shape index: {}]   ;;  %s2362_s14 = inlined_call_operand.hbm [shape: f32[8,32], index: 14, kind: input, shape index: {}]   ;;  %s2363_s15 = inlined_call_operand.hbm [shape: f32[2,8,32], index: 15, kind: output, shape index: {}]  }
   0x1   :  { %2372 = sst [smem:[#allocation30_spill]] %s2350_s2 }
   0x2   :  { %2373 = sst [smem:[#allocation31_spill]] %s2354_s6 }
   0x3   :  { %2374 = sst [smem:[#allocation32_spill]] %s2356_s8 }
   0x4   :  { %20 = vsyncpa [#allocation3], 0 }
   0x5   :  { %21 = vsyncpa [#allocation6], 0 }
   0x6   :  { %22 = vsyncpa [#allocation9], 0 }
   0x7   :  { %23 = vsyncpa [#allocation12], 0 }
   0x8   :  { %24 = vsyncpa [#allocation15], 0 }
   0x9   :  { %25 = vsyncpa [#allocation4], 0 }
   0xa   :  { %27 = vsyncpa [#allocation4 + $0x1], 0  ;;  %s2072_s18 = smov 0   ;;  %s2074_s19 = smov 0  }
   0xb   :  { %s2076_s20 = smov 0   ;;  %s2078_s21 = smov 0  }
   0xc LB: > { %2375 = sst [smem:[#allocation23_spill]] %s1951_s18  ;;  %s2093_s22 = sadd.s32 4294967295, %s1963_s21   ;;  %s1963_s21 = sphi %s2078_s21, %s2393_s21   ;;  %s1959_s20 = sphi %s2076_s20, %s2395_s20   ;;  %s1955_s19 = sphi %s2074_s19, %s2397_s19   ;;  %s1951_s18 = sphi %s2072_s18, %s2396_s18  }
   0xd   : > { %2376 = sst [smem:[#allocation24_spill]] %s1959_s20  ;;  %s1388_s23 = sadd.s32 4294967294, %s1963_s21  }
   0xe   : > { %2377 = sst [smem:[#allocation25_spill]] %s1963_s21  ;;  %s2097_s24 = sadd.s32 1, %s1963_s21  }
   0xf   : > { %2378 = sst [smem:[#allocation26_spill]] %s2097_s24  ;;  %s360_s25 = sadd.s32 1, %s1959_s20 }
  0x10   : > { %s357_s26 = ssub.s32 %s1963_s21, %s2097_s24  ;;  %p370_p0 = scmp.ne.s32.totalorder %s1959_s20, %s1955_s19 }
  0x11   : > { %p358_p1 = scmp.eq.s32.totalorder %s357_s26, 0  ;;  %p371_p2 = scmp.eq.s32.totalorder %s2093_s22, 1 }
  0x12   : > { %p376_p3 = scmp.ne.s32.totalorder %s1955_s19, %s1951_s18  ;;  %p377_p4 = scmp.eq.s32.totalorder %s1388_s23, 1 }
  0x13   : > { %s2108_s27 = scalar_select %p358_p1, %s1959_s20, %s360_s25  }
  0x14   : > { %p2110_p5 = por %p371_p2, %p370_p0  ;;  %p2114_p6 = por %p377_p4, %p376_p3 }
  0x15   : > { %2379 = sst [smem:[#allocation27_spill]] %s2108_s27  ;;  %p1389_p7 = scmp.ge.s32.totalorder %s1963_s21, 1 }
  0x16   : > { %s2380_s28 = scalar_select %p2110_p5, 1, 0 }
  0x17   : > { %s2382_s29 = scalar_select %p2114_p6, 1, 0 }
  0x18   : > { %2381 = sst [smem:[#allocation28_spill]] %s2380_s28  ;;  %p384_p8 = scmp.lt.s32.totalorder %s1963_s21, 3 }
  0x19   : > { %2383 = sst [smem:[#allocation29_spill]] %s2382_s29  ;;  %p1533_p9 = scmp.eq.s32.totalorder %s2093_s22, 0 }
  0x1a   : > { %p2121_p10 = pnand %p1389_p7, %p384_p8  ;;  %s2385_s2 = sld [smem:[#allocation30_spill]] }
  0x1b   : > { %s1965_s25 = smov [#allocation5]   ;;  %s2386_s6 = sld [smem:[#allocation31_spill]] }
  0x1c   : > { %p1504_p11 = pneg %p2121_p10  ;;  %s410_s26 = sshll.u32 %s1965_s25, 4  ;;  %s411_s26 = int_to_ptr.vmem [resolvable:$true] %s410_s26 }
  0x1d   : > { %s2388_s8 = sld [smem:[#allocation32_spill]]  ;;  %s1966_s18 = smov [#allocation8]  }
  0x1e   : > { %p2135_p12 = pnand %p1533_p9, %p1504_p11  ;;  %s440_s25 = sshll.u32 %s1966_s18, 4  ;;  %s441_s25 = int_to_ptr.vmem [resolvable:$true] %s440_s25 }
  0x1f   : > { %s1967_s21 = smov [#allocation11]   ;;  %s1968_s16 = smov [#allocation2]  }
  0x20   : > { %s408_s23 = sshll.u32 %s2385_s2, 4  ;;  %s464_s28 = sshll.u32 %s1967_s21, 4  ;;  %s409_s23 = int_to_ptr.hbm [resolvable:$true] %s408_s23  ;;  %s465_s28 = int_to_ptr.vmem [resolvable:$true] %s464_s28 }
  0x21   : > { %s438_s24 = sshll.u32 %s2386_s6, 4  ;;  %s396_s6 = sshll.u32 %s2349_s1, 4  ;;  %s439_s24 = int_to_ptr.hbm [resolvable:$true] %s438_s24  ;;  %s397_s6 = int_to_ptr.hbm [resolvable:$true] %s396_s6 }
  0x22   : > { %1510 = dma.hbm_to_vmem [thread:$0]  (!%p2135_p12), %s409_s23, 16, %s411_s26, [#allocation6]  }
  0x23   : > { %s462_s2 = sshll.u32 %s2388_s8, 4  ;;  %s398_s18 = sshll.u32 %s1968_s16, 4  ;;  %s463_s2 = int_to_ptr.hbm [resolvable:$true] %s462_s2  ;;  %s399_s18 = int_to_ptr.vmem [resolvable:$true] %s398_s18 }
  0x24   : > { %1516 = dma.hbm_to_vmem [thread:$0]  (!%p2135_p12), %s439_s24, 16, %s441_s25, [#allocation9]  }
  0x25   : > { %1522 = dma.hbm_to_vmem [thread:$0]  (!%p2135_p12), %s463_s2, 16, %s465_s28, [#allocation12]  }
  0x26   : > { %s423_s23 = sshll.u32 %s2352_s4, 4  ;;  %s450_s25 = sshll.u32 %s2355_s7, 4  ;;  %s424_s23 = int_to_ptr.hbm [resolvable:$true] %s423_s23  ;;  %s451_s25 = int_to_ptr.hbm [resolvable:$true] %s450_s25 }
  0x27   : > { %1507 = dma.hbm_to_vmem [thread:$0]  (!%p2135_p12), %s397_s6, 16, %s399_s18, [#allocation3]  }
  0x28   : > { %s1969_s21 = smov [#allocation7]   ;;  %s1970_s2 = smov [#allocation10]  }
  0x29   : > { %s425_s20 = sshll.u32 %s1969_s21, 4  ;;  %s452_s28 = sshll.u32 %s1970_s2, 4  ;;  %s426_s20 = int_to_ptr.vmem [resolvable:$true] %s425_s20  ;;  %s453_s28 = int_to_ptr.vmem [resolvable:$true] %s452_s28 }
  0x2a   : > { %1513 = dma.hbm_to_vmem [thread:$0]  (!%p2135_p12), %s424_s23, 16, %s426_s20, [#allocation6]  }
  0x2b   : > { %s473_s16 = sshll.u32 %s2357_s9, 4  ;;  %s1971_s6 = smov [#allocation13]   ;;  %s474_s16 = int_to_ptr.hbm [resolvable:$true] %s473_s16 }
  0x2c   : > { %1519 = dma.hbm_to_vmem [thread:$0]  (!%p2135_p12), %s451_s25, 16, %s453_s28, [#allocation9]  }
  0x2d   : > { %s475_s18 = sshll.u32 %s1971_s6, 4  ;;  %s500_s26 = sshll.u32 %s2362_s14, 4  ;;  %s476_s18 = int_to_ptr.vmem [resolvable:$true] %s475_s18  ;;  %s501_s26 = int_to_ptr.hbm [resolvable:$true] %s500_s26 }
  0x2e   : > { %s1972_s21 = smov 64   ;;  %s1973_s23 = smov 4  }
  0x2f   : > { %1525 = dma.hbm_to_vmem [thread:$0]  (!%p2135_p12), %s474_s16, 256, %s476_s18, [#allocation12], %s1972_s21, %s1972_s21, %s1973_s23  }
  0x30   : > { %s1974_s20 = smov [#allocation14]   ;;  %522 = sbr.rel (%p2121_p10) target bundleno = 2569 (0xa09), region = 80 }
  0x31   : > { %s502_s2 = sshll.u32 %s1974_s20, 4  ;;  %s503_s2 = int_to_ptr.vmem [resolvable:$true] %s502_s2 }
  0x32   : > { %1528 = dma.hbm_to_vmem [thread:$0]  (!%p2135_p12), %s501_s26, 128, %s503_s2, [#allocation15]  }
  0x35   : > { %1926 = dma.done.wait (%p1533_p9), [#allocation3], 16  }
  0x36   : > { %1928 = vsyncadd (%p1533_p9), [#allocation3], 4294967280 }
  0x37   : > { %1930 = dma.done.wait (%p1533_p9), [#allocation6], 32  }
  0x38   : > { %1932 = vsyncadd (%p1533_p9), [#allocation6], 4294967264 }
  0x39   : > { %1934 = dma.done.wait (%p1533_p9), [#allocation9], 32  }
  0x3a   : > { %1936 = vsyncadd (%p1533_p9), [#allocation9], 4294967264 }
  0x3b   : > { %1938 = dma.done.wait (%p1533_p9), [#allocation12], 272  }
  0x3c   : > { %1940 = vsyncadd (%p1533_p9), [#allocation12], 4294967024 }
  0x3d   : > { %1942 = dma.done.wait (%p1533_p9), [#allocation15], 128  }
  0x3e   : > { %1944 = vsyncadd (%p1533_p9), [#allocation15], 4294967168  ;;  %p605_p13 = scmp.lt.s32.totalorder %s2093_s22, 1  ;;  %vm613_vm0 = vcmask 261120   ;;  %v1975_v2 = vmov 32.0   ;;  %v1463_v14 = vld [vmem:[%s2351_s3 + $0x8] sm:$0xff] }
  0x3f   : > { %1617 = vrcp.f32 %v1975_v2  ;;  %681 = vmatpush.bf16.msra.mxu0 %v1463_v14  ;;  %v1462_v15 = vld [vmem:[%s2351_s3] sm:$0xff]  ;;  %s1976_s26 = smov 32   ;;  %s1977_s21 = smov 124   ;;  %vm697_vm5 = vcmask 31744   ;;  %vm789_vm6 = vcmask 1043456   ;;  %vm699_vm7 = vcmask 64512  }
  0x40   : > { %s606_s29 = scalar_select %p605_p13, %s2093_s22, 1  ;;  %v2218_v16 = vld [vmem:[%s2361_s13] sm:$0xff]  ;;  %vm701_vm8 = vcmask 97280   ;;  %vm703_vm9 = vcmask 130048   ;;  %vm705_vm10 = vcmask 162816   ;;  %vm707_vm11 = vcmask 195584  }
  0x41   : > { %729 = vrot.lane.b32.xlu2 %v2218_v16, %s1976_s26  ;;  %v1609_v26 = vld [vmem:[#allocation2] ss:$0 sm:$0xff]  ;;  %v1610_v29 = vld [vmem:[#allocation5] ss:$0 sm:$0xff]  ;;  %v1611_v33 = vld [vmem:[#allocation7] ss:$0 sm:$0xff] }
  0x42   : > { %s1409_s30 = sshll.u32 %s606_s29, 3  ;;  %s1978_s23 = smov 92   ;;  %vm709_vm12 = vcmask 228352   ;;  %v689_v50 = vld [vmem:[#allocation14] sm:$0xff] }
  0x43   : > { %s608_s8 = scalar_lea.vmem %s2348_s0, %s1409_s30  ;;  %682 = vmatpush.bf16.msra.mxu0 %v1462_v15  ;;  %s1979_s20 = smov 100  }
  0x44   : > { %v2200_v0 = vld [vmem:[%s608_s8] sm:$0xff]  ;;  %s1980_s2 = smov 64   ;;  %s1981_s29 = smov 4  }
  0x45   : > { %v614_v1 = vsel %vm613_vm0, %v2200_v0, 0.0  ;;  %v1618_v3 = vpop.eup %1617  ;;  %s1982_s30 = smov 88   ;;  %s1983_s25 = smov 96  }
  0x46   : > { %615 = vadd.xlane.f32.xlu0 %v614_v1  ;;  %v618_v4 = vmul.f32 32.0, %v1618_v3  ;;  %vm622_vm1 = vweird.f32 %v1618_v3  ;;  %s1984_s28 = smov 120   ;;  %s1985_s8 = smov 80  }
  0x47   : > { %s1986_s27 = smov 104   ;;  %s1987_s16 = smov 112  }
  0x48   : > { %v619_v5 = vsub.f32 1.0, %v618_v4  ;;  %s1988_s6 = smov 72   ;;  %s1989_s18 = smov 56  }
  0x4a   : > { %v620_v6 = vmul.f32 %v1618_v3, %v619_v5 }
  0x4c   : > { %v621_v7 = vadd.f32 %v1618_v3, %v620_v6 }
  0x4e   : > { %v2204_v8 = vsel %vm622_vm1, %v1618_v3, %v621_v7 }
  0x9b   : > { %v730_v2 = vpop.permute.xlu2 %729 }
  0xb9   : > { %v616_v9 = vpop.xlane.xlu0 %615 }
  0xba   : > { %v624_v10 = vmul.f32 %v2204_v8, %v616_v9 }
  0xbc   : > { %v625_v11 = vsub.f32 %v2200_v0, %v624_v10 }
  0xbe   : > { %v626_v12 = vmul.f32 %v625_v11, %v625_v11 }
  0xc0   : > { %v627_v13 = vsel %vm613_vm0, %v626_v12, 0.0 }
  0xc1   : > { %628 = vadd.xlane.f32.xlu0 %v627_v13 }
 0x134   : > { %v629_v17 = vpop.xlane.xlu0 %628 }
 0x135   : > { %v630_v18 = vmul.f32 %v629_v17, %v2204_v8 }
 0x137   : > { %v631_v19 = vadd.f32 1e-05, %v630_v18 }
 0x139   : > { %1619 = vrsqrt.f32 %v631_v19  ;;  %vm638_vm3 = vweird.f32 %v631_v19 }
 0x13f   : > { %v1620_v20 = vpop.eup %1619 }
 0x140   : > { %v633_v21 = vmul.f32 %v1620_v20, %v631_v19  ;;  %vm639_vm2 = vweird.f32 %v1620_v20 }
 0x141   : > { %vm640_vm4 = vmor %vm638_vm3, %vm639_vm2 }
 0x142   : > { %v634_v22 = vmul.f32 %v1620_v20, %v633_v21 }
 0x144   : > { %v635_v23 = vmul.f32 0.5, %v634_v22 }
 0x146   : > { %v636_v24 = vsub.f32 1.5, %v635_v23 }
 0x148   : > { %v637_v25 = vmul.f32 %v1620_v20, %v636_v24 }
 0x14a   : > { %v641_v27 = vsel %vm640_vm4, %v1620_v20, %v637_v25 }
 0x14b   : > { %v642_v28 = vmul.f32 %v641_v27, %v625_v11 }
 0x14d   : > { %v646_v30 = vmul.f32 %v1609_v26, %v642_v28 }
 0x14f   : > { %v650_v31 = vadd.f32 %v1610_v29, %v646_v30 }
 0x151   : > { %v651_v32 = vpack.c.bf16 %v650_v31, %v650_v31 }
 0x153   : > { %1418 = vmatmul.msk.bf16.vlgmr.msra.gmra.mxu0 %vm613_vm0, %v651_v32 }
 0x1d0   : > { %v684_v34 = vpop.f32.mrf.mxu0 }
 0x1d1   : > { %v685_v35 = vadd.f32 %v1611_v33, %v684_v34 }
 0x1d3   : > { %691 = vrot.lane.b32.xlu0 %v685_v35, %s1977_s21  ;;  %715 = vrot.lane.b32.xlu1 %v685_v35, %s1978_s23  ;;  %v740_v36 = vpack.c.bf16 %v685_v35, %v685_v35  ;;  %v711_v63 = vmul.f32 %v2218_v16, %v685_v35  ;;  %v732_v3 = vmul.f32 %v730_v2, %v685_v35  ;;  %s1990_s23 = smov 48  }
 0x1d5   : > { %v782_v37 = vunpack.c.l.b16 %v740_v36 }
 0x1d7   : > { %v2224_v39 = vpack.c.b16 %v782_v37, %v782_v37 }
 0x1d8   : > { %v686_v38 = vpop.f32.mrf.mxu0 }
 0x1d9   : > { %v741_v38 = vld [vmem:[%s2353_s5] sm:$0xf] }
 0x1db   : > { %718 = vrot.lane.b32.xlu1 %v685_v35, %s1979_s20  ;;  %784 = vrot.lane.b32.xlu0 %v2224_v39, %s1980_s2  ;;  %s1459_s2 = sshll.u32 %s2093_s22, 3 }
 0x1e3   : > { %694 = vrot.lane.b32.xlu1 %v685_v35, %s1981_s29  ;;  %s1991_s29 = smov 40  }
 0x245   : > { %v692_v40 = vpop.permute.xlu0 %691  ;;  %v716_v41 = vpop.permute.xlu1 %715 }
 0x24d   : > { %v719_v42 = vpop.permute.xlu1 %718  ;;  %v785_v43 = vpop.permute.xlu0 %784 }
 0x24e   : > { %v721_v44 = vsel %vm697_vm5, %v716_v41, %v719_v42  ;;  %v791_v45 = vsel %vm789_vm6, %v785_v43, 0 }
 0x24f   : > { %v722_v46 = vsel %vm699_vm7, %v721_v44, %v716_v41  ;;  %800 = vmatpush.bf16.msra.mxu2 %v791_v45 }
 0x250   : > { %v723_v47 = vsel %vm701_vm8, %v722_v46, %v719_v42 }
 0x251   : > { %v724_v48 = vsel %vm703_vm9, %v723_v47, %v716_v41 }
 0x252   : > { %v725_v49 = vsel %vm705_vm10, %v724_v48, %v719_v42 }
 0x253   : > { %v726_v51 = vsel %vm707_vm11, %v725_v49, %v716_v41 }
 0x254   : > { %v727_v52 = vsel %vm709_vm12, %v726_v51, %v719_v42 }
 0x255   : > { %v695_v53 = vpop.permute.xlu1 %694  ;;  %v733_v54 = vmul.f32 %v727_v52, %v689_v50 }
 0x256   : > { %v698_v55 = vsel %vm697_vm5, %v692_v40, %v695_v53  ;;  %vm1215_vm5 = vcmask 523264  }
 0x257   : > { %v700_v56 = vsel %vm699_vm7, %v698_v55, %v692_v40  ;;  %735 = vrot.lane.b32.xlu2 %v733_v54, %s1976_s26 }
 0x258   : > { %v702_v57 = vsel %vm701_vm8, %v700_v56, %v695_v53 }
 0x259   : > { %v704_v58 = vsel %vm703_vm9, %v702_v57, %v692_v40 }
 0x25a   : > { %v706_v59 = vsel %vm705_vm10, %v704_v58, %v695_v53 }
 0x25b   : > { %v708_v60 = vsel %vm707_vm11, %v706_v59, %v692_v40  ;;  %v890_v40 = vsel %vm789_vm6, %v741_v38, 0 }
 0x25c   : > { %v710_v61 = vsel %vm709_vm12, %v708_v60, %v695_v53 }
 0x25d   : > { %v712_v62 = vmul.f32 %v710_v61, %v689_v50 }
 0x25f   : > { %v713_v1 = vadd.f32 %v712_v62, %v711_v63  ;;  %v742_v62 = vld [vmem:[%s2353_s5 + $0x4] sm:$0xf] }
 0x260   : > { %v871_v63 = vsel %vm789_vm6, %v742_v62, 0 }
 0x261   : > { %v714_v10 = vpack.c.bf16 %v713_v1, %v713_v1  ;;  %880 = vmatpush.bf16.msrb.mxu0 %v871_v63 }
 0x263   : > { %v808_v11 = vunpack.c.l.b16 %v714_v10 }
 0x265   : > { %v809_v12 = vpack.c.b16 %v808_v11, %v808_v11 }
 0x2b1   : > { %v736_v4 = vpop.permute.xlu2 %735 }
 0x2b2   : > { %v738_v5 = vadd.f32 %v736_v4, %v732_v3 }
 0x2b4   : > { %v739_v6 = vpack.c.bf16 %v738_v5, %v738_v5 }
 0x2b6   : > { %v746_v7 = vunpack.c.l.b16 %v739_v6 }
 0x2b8   : > { %v747_v9 = vpack.c.b16 %v746_v7, %v746_v7 }
 0x2ba   : > { %812 = vrot.lane.b32.xlu0 %v747_v9, %s1982_s30  ;;  %748 = vrot.lane.b32.xlu2 %v747_v9, %s1983_s25 }
 0x2c2   : > { %810 = vrot.lane.b32.xlu0 %v809_v12, %s1984_s28 }
 0x2ca   : > { %907 = vrot.lane.b32.xlu0 %v747_v9, %s1985_s8 }
 0x2d2   : > { %982 = vrot.lane.b32.xlu0 %v809_v12, %s1986_s27  ;;  %s1245_s27 = scalar_lea.hbm %s2363_s15, %s1459_s2 }
 0x314   : > { %v749_v13 = vpop.permute.xlu2 %748 }
 0x315   : > { %v754_v14 = vsel %vm699_vm7, %v749_v13, 0 }
 0x316   : > { %763 = vmatpush.bf16.xpose.msra.mxu1 %v754_v14 }
 0x31d   : > { %1419 = vmatmul.msk.bf16.vlgmr.msra.gmra.mxu1 %vm699_vm7, %v714_v10 }
 0x31e   : > { %899 = vmatpush.bf16.msrb.mxu1 %v890_v40 }
 0x32c   : > { %v813_v15 = vpop.permute.xlu0 %812 }
 0x32d   : > { %v818_v16 = vsel %vm699_vm7, %v813_v15, 0 }
 0x32e   : > { %827 = vmatpush.bf16.xpose.msra.mxu3 %v818_v16 }
 0x334   : > { %v811_v17 = vpop.permute.xlu0 %810 }
 0x335   : > { %1421 = vmatmul.msk.bf16.vlgmr.msra.gmra.mxu3 %vm699_vm7, %v811_v17 }
 0x33c   : > { %v908_v18 = vpop.permute.xlu0 %907 }
 0x33d   : > { %v913_v19 = vsel %vm699_vm7, %v908_v18, 0 }
 0x33e   : > { %922 = vmatpush.bf16.xpose.msrb.mxu3 %v913_v19 }
 0x344   : > { %v983_v31 = vpop.permute.xlu0 %982 }
 0x39a   : > { %v765_v20 = vpop.f32.mrf.mxu1 }
 0x39b   : > { %v769_v21 = vsel %vm699_vm7, %v765_v20, -inf }
 0x39c   : > { %770 = vmax.xlane.f32.xlu1 %v769_v21  ;;  %v743_v21 = vld [vmem:[%s2353_s5 + $0x8] sm:$0xf] }
 0x3a2   : > { %v767_v22 = vpop.f32.mrf.mxu1 }
 0x3a3   : > { %v966_v22 = vsel %vm789_vm6, %v743_v21, 0 }
 0x3a4   : > { %975 = vmatpush.bf16.msra.mxu0 %v966_v22 }
 0x3b5   : > { %905 = vrot.lane.b32.xlu1 %v809_v12, %s1987_s16 }
 0x3b8   : > { %v829_v23 = vpop.f32.mrf.mxu3 }
 0x3b9   : > { %v833_v24 = vsel %vm699_vm7, %v829_v23, -inf }
 0x3ba   : > { %834 = vmax.xlane.f32.xlu0 %v833_v24 }
 0x3c0   : > { %v831_v25 = vpop.f32.mrf.mxu3 }
 0x40f   : > { %v771_v26 = vpop.xlane.xlu1 %770 }
 0x410   : > { %v772_v27 = vsub.f32 %v765_v20, %v771_v26 }
 0x412   : > { %v773_v28 = vmul.f32 1.442695, %v772_v27 }
 0x414   : > { %1621 = vpow2.f32 %v773_v28 }
 0x41a   : > { %v1622_v29 = vpop.eup %1621 }
 0x41b   : > { %v775_v30 = vsel %vm699_vm7, %v1622_v29, 0.0 }
 0x41c   : > { %776 = vadd.xlane.f32.xlu2 %v775_v30 }
 0x427   : > { %v906_v32 = vpop.permute.xlu1 %905 }
 0x428   : > { %1425 = vmatmul.msk.bf16.vlgmr.msrb.gmra.mxu3 %vm699_vm7, %v906_v32 }
 0x42d   : > { %v835_v33 = vpop.xlane.xlu0 %834 }
 0x42e   : > { %v836_v34 = vsub.f32 %v829_v23, %v835_v33 }
 0x430   : > { %v837_v35 = vmul.f32 1.442695, %v836_v34 }
 0x432   : > { %1623 = vpow2.f32 %v837_v35 }
 0x434   : > { %984 = vrot.lane.b32.xlu2 %v747_v9, %s1988_s6 }
 0x438   : > { %v1624_v36 = vpop.eup %1623 }
 0x439   : > { %v839_v37 = vsel %vm699_vm7, %v1624_v36, 0.0 }
 0x43a   : > { %840 = vadd.xlane.f32.xlu0 %v839_v37 }
 0x44e   : > { %845 = vrot.lane.b32.xlu0 %v2224_v39, %s1989_s18  ;;  %s1249_s18 = sshll.u32 %s1245_s27, 4  ;;  %s1250_s18 = int_to_ptr.hbm [resolvable:$true] %s1249_s18 }
 0x44f   : > { %s1895_s17 = sshra.s32 %s1250_s18, 4  ;;  %s1896_s17 = int_to_ptr.hbm [resolvable:$true] %s1895_s17 }
 0x450   : > { %s1897_s24 = scalar_lea.hbm %s1896_s17, 8  ;;  %p1902_p3 = scmp.lt.s32.totalorder %s1896_s17, %s2363_s15 }
 0x451   : > { %p1898_p0 = scmp.ne.s32.totalorder %s1896_s17, %s1897_s24 }
 0x453   : > { %p1899_p1 = pnand %p1898_p0, %p2110_p5 }
 0x455   : > { %p1900_p2 = pneg %p1899_p1 }
 0x48f   : > { %v777_v41 = vpop.xlane.xlu2 %776 }
 0x490   : > { %1625 = vrcp.f32 %v777_v41  ;;  %v744_v41 = vld [vmem:[%s2353_s5 + $0xc] sm:$0xf] }
 0x496   : > { %v1626_v42 = vpop.eup %1625 }
 0x497   : > { %v985_v43 = vpop.permute.xlu2 %984  ;;  %v779_v44 = vmul.f32 %v1626_v42, %v1622_v29 }
 0x498   : > { %v990_v45 = vsel %vm699_vm7, %v985_v43, 0 }
 0x499   : > { %999 = vmatpush.bf16.xpose.msra.mxu1 %v990_v45  ;;  %v780_v46 = vpack.c.bf16 %v779_v44, %v779_v44 }
 0x49b   : > { %1420 = vmatmul.msk.bf16.vlgmr.msra.gmra.mxu2 %vm699_vm7, %v780_v46 }
 0x4ab   : > { %v924_v47 = vpop.f32.mrf.mxu3 }
 0x4ac   : > { %v928_v48 = vsel %vm699_vm7, %v924_v47, -inf }
 0x4ad   : > { %929 = vmax.xlane.f32.xlu1 %v928_v48  ;;  %v841_v49 = vpop.xlane.xlu0 %840 }
 0x4ae   : > { %1627 = vrcp.f32 %v841_v49 }
 0x4b3   : > { %v926_v50 = vpop.f32.mrf.mxu3 }
 0x4b4   : > { %v1628_v51 = vpop.eup %1627 }
 0x4b5   : > { %v843_v52 = vmul.f32 %v1628_v51, %v1624_v36 }
 0x4b7   : > { %v844_v55 = vpack.c.bf16 %v843_v52, %v843_v52 }
 0x4c0   : > { %v846_v53 = vpop.permute.xlu0 %845 }
 0x4c1   : > { %v851_v54 = vsel %vm789_vm6, %v846_v53, 0 }
 0x4c2   : > { %860 = vmatpush.bf16.msrb.mxu2 %v851_v54 }
 0x4c5   : > { %1422 = vmatmul.msk.bf16.vlgmr.msrb.gmra.mxu2 %vm699_vm7, %v844_v55 }
 0x51e   : > { %v802_v56 = vpop.f32.mrf.mxu2 }
 0x51f   : > { %v806_v57 = vpack.c.bf16 %v802_v56, %v802_v56 }
 0x520   : > { %v930_v58 = vpop.xlane.xlu1 %929 }
 0x521   : > { %v931_v59 = vsub.f32 %v924_v47, %v930_v58  ;;  %1424 = vmatmul.msk.bf16.vlgmr.msrb.gmra.mxu1 %vm699_vm7, %v806_v57  ;;  %v1612_v47 = vld [vmem:[#allocation8] ss:$0 sm:$0xff]  ;;  %v1465_v57 = vld [vmem:[#allocation13 + $0x8] sm:$0xff]  ;;  %v1464_v58 = vld [vmem:[#allocation13] sm:$0xff] }
 0x523   : > { %v932_v60 = vmul.f32 1.442695, %v931_v59 }
 0x525   : > { %1629 = vpow2.f32 %v932_v60 }
 0x526   : > { %v804_v61 = vpop.f32.mrf.mxu2 }
 0x52b   : > { %v1630_v1 = vpop.eup %1629 }
 0x52c   : > { %v934_v2 = vsel %vm699_vm7, %v1630_v1, 0.0 }
 0x52d   : > { %935 = vadd.xlane.f32.xlu1 %v934_v2 }
 0x531   : > { %1428 = vmatmul.msk.bf16.vlgmr.msra.gmra.mxu1 %vm699_vm7, %v983_v31 }
 0x546   : > { %940 = vrot.lane.b32.xlu1 %v2224_v39, %s1990_s23  ;;  %s602_s23 = sand.u32 1, %s1955_s19  }
 0x547   : > { %s1408_s20 = sshll.u32 %s602_s23, 3  ;;  %s1235_s22 = scalar_lea.sflag [#allocation4], %s602_s23 }
 0x548   : > { %v862_v3 = vpop.f32.mrf.mxu2  ;;  %s604_s16 = scalar_lea.vmem [#allocation16], %s1408_s20  ;;  %s1901_s20 = scalar_lea.hbm %s2363_s15, 16 }
 0x549   : > { %v866_v4 = vpack.c.bf16 %v862_v3, %v862_v3  ;;  %s1247_s6 = sshll.u32 %s604_s16, 4  ;;  %p1903_p4 = scmp.lt.s32.totalorder %s1901_s20, %s1897_s24  ;;  %s1248_s6 = int_to_ptr.vmem [resolvable:$true] %s1247_s6 }
 0x54b   : > { %1423 = vmatmul.msk.bf16.vlgmr.msrb.gmra.mxu0 %vm699_vm7, %v866_v4  ;;  %v1613_v4 = vld [vmem:[#allocation10] ss:$0 sm:$0xff]  ;;  %p1904_p7 = por %p1903_p4, %p1902_p3 }
 0x54c   : > { %1127 = vmatpush.bf16.msrb.mxu0 %v1465_v57 }
 0x54d   : > { %p1905_p8 = pnand %p1904_p7, %p1900_p2 }
 0x550   : > { %v864_v5 = vpop.f32.mrf.mxu2  ;;  %1128 = vmatpush.bf16.msrb.mxu0 %v1464_v58 }
 0x59e   : > { %v901_v6 = vpop.f32.mrf.mxu1 }
 0x5a0   : > { %v936_v9 = vpop.xlane.xlu1 %935 }
 0x5a1   : > { %1631 = vrcp.f32 %v936_v9 }
 0x5a6   : > { %v903_v7 = vpop.f32.mrf.mxu1 }
 0x5a7   : > { %v1632_v12 = vpop.eup %1631  ;;  %v1614_v7 = vld [vmem:[#allocation11] ss:$0 sm:$0xff] }
 0x5a8   : > { %v938_v14 = vmul.f32 %v1632_v12, %v1630_v1 }
 0x5aa   : > { %v939_v17 = vpack.c.bf16 %v938_v14, %v938_v14 }
 0x5ae   : > { %v1001_v10 = vpop.f32.mrf.mxu1 }
 0x5af   : > { %v1005_v11 = vsel %vm699_vm7, %v1001_v10, -inf }
 0x5b0   : > { %1006 = vmax.xlane.f32.xlu2 %v1005_v11 }
 0x5b6   : > { %v1003_v13 = vpop.f32.mrf.mxu1 }
 0x5b8   : > { %v941_v15 = vpop.permute.xlu1 %940 }
 0x5b9   : > { %v946_v16 = vsel %vm789_vm6, %v941_v15, 0 }
 0x5ba   : > { %955 = vmatpush.bf16.msra.mxu2 %v946_v16 }
 0x5bd   : > { %1426 = vmatmul.msk.bf16.vlgmr.msra.gmra.mxu2 %vm699_vm7, %v939_v17 }
 0x5c8   : > { %v882_v18 = vpop.f32.mrf.mxu0 }
 0x5c9   : > { %v902_v19 = vadd.f32 %v901_v6, %v882_v18  ;;  %v1469_v18 = vld [vmem:[%s2359_s11 + $0x18] sm:$0xff] }
 0x5ca   : > { %1223 = vmatpush.bf16.msrb.mxu1 %v1469_v18 }
 0x5d0   : > { %v884_v20 = vpop.f32.mrf.mxu0 }
 0x623   : > { %v1007_v23 = vpop.xlane.xlu2 %1006 }
 0x624   : > { %v1008_v24 = vsub.f32 %v1001_v10, %v1007_v23  ;;  %v1468_v23 = vld [vmem:[%s2359_s11 + $0x10] sm:$0xff] }
 0x625   : > { %1224 = vmatpush.bf16.msrb.mxu1 %v1468_v23 }
 0x626   : > { %v1009_v25 = vmul.f32 1.442695, %v1008_v24 }
 0x628   : > { %1633 = vpow2.f32 %v1009_v25 }
 0x62e   : > { %v1634_v26 = vpop.eup %1633 }
 0x62f   : > { %v1011_v27 = vsel %vm699_vm7, %v1634_v26, 0.0 }
 0x630   : > { %1012 = vadd.xlane.f32.xlu2 %v1011_v27 }
 0x640   : > { %v957_v28 = vpop.f32.mrf.mxu2 }
 0x641   : > { %v961_v29 = vpack.c.bf16 %v957_v28, %v957_v28  ;;  %v1467_v28 = vld [vmem:[%s2359_s11 + $0x8] sm:$0xff] }
 0x642   : > { %1225 = vmatpush.bf16.msrb.mxu1 %v1467_v28 }
 0x643   : > { %1427 = vmatmul.msk.bf16.vlgmr.msra.gmra.mxu0 %vm699_vm7, %v961_v29 }
 0x648   : > { %v959_v30 = vpop.f32.mrf.mxu2  ;;  %1017 = vrot.lane.b32.xlu2 %v2224_v39, %s1991_s29  ;;  %v1043_v39 = vsel %vm789_vm6, %v744_v41, 0 }
 0x649   : > { %1052 = vmatpush.bf16.msrb.mxu2 %v1043_v39 }
 0x6a3   : > { %v1013_v31 = vpop.xlane.xlu2 %1012 }
 0x6a4   : > { %1635 = vrcp.f32 %v1013_v31 }
 0x6aa   : > { %v1636_v32 = vpop.eup %1635 }
 0x6ab   : > { %v1015_v33 = vmul.f32 %v1636_v32, %v1634_v26  ;;  %v1018_v34 = vpop.permute.xlu2 %1017  ;;  %v1466_v32 = vld [vmem:[%s2359_s11] sm:$0xff] }
 0x6ac   : > { %v1023_v35 = vsel %vm789_vm6, %v1018_v34, 0  ;;  %1226 = vmatpush.bf16.msrb.mxu1 %v1466_v32 }
 0x6ad   : > { %v1016_v36 = vpack.c.bf16 %v1015_v33, %v1015_v33  ;;  %1032 = vmatpush.bf16.msra.mxu3 %v1023_v35 }
 0x6b0   : > { %1429 = vmatmul.msk.bf16.vlgmr.msra.gmra.mxu3 %vm699_vm7, %v1016_v36 }
 0x6c0   : > { %v977_v37 = vpop.f32.mrf.mxu0 }
 0x6c1   : > { %v981_v38 = vadd.f32 %v977_v37, %v902_v19 }
 0x6c8   : > { %v979_v40 = vpop.f32.mrf.mxu0 }
 0x733   : > { %v1034_v42 = vpop.f32.mrf.mxu3 }
 0x734   : > { %v1038_v43 = vpack.c.bf16 %v1034_v42, %v1034_v42 }
 0x736   : > { %1430 = vmatmul.msk.bf16.vlgmr.msrb.gmra.mxu2 %vm699_vm7, %v1038_v43 }
 0x73b   : > { %v1036_v44 = vpop.f32.mrf.mxu3 }
 0x7b9   : > { %v1054_v45 = vpop.f32.mrf.mxu2 }
 0x7ba   : > { %v1058_v46 = vadd.f32 %v1054_v45, %v981_v38 }
 0x7bc   : > { %v1059_v48 = vadd.f32 %v1058_v46, %v2200_v0 }
 0x7be   : > { %v2287_v49 = vadd.f32 %v1612_v47, %v1059_v48 }
 0x7c0   : > { %v1067_v50 = vsel %vm613_vm0, %v2287_v49, 0.0 }
 0x7c1   : > { %v1056_v51 = vpop.f32.mrf.mxu2  ;;  %1068 = vadd.xlane.f32.xlu0 %v1067_v50 }
 0x834   : > { %v1069_v52 = vpop.xlane.xlu0 %1068 }
 0x835   : > { %v1070_v53 = vmul.f32 %v1069_v52, %v2204_v8 }
 0x837   : > { %v1071_v54 = vsub.f32 %v2287_v49, %v1070_v53 }
 0x839   : > { %v1072_v55 = vmul.f32 %v1071_v54, %v1071_v54 }
 0x83b   : > { %v1073_v56 = vsel %vm613_vm0, %v1072_v55, 0.0 }
 0x83c   : > { %1074 = vadd.xlane.f32.xlu2 %v1073_v56 }
 0x8af   : > { %v1075_v0 = vpop.xlane.xlu2 %1074 }
 0x8b0   : > { %v1076_v59 = vmul.f32 %v1075_v0, %v2204_v8  ;;  %v1615_v8 = vld [vmem:[%s2358_s10] ss:$0 sm:$0xff] }
 0x8b2   : > { %v1077_v60 = vadd.f32 1e-05, %v1076_v59  ;;  %v1616_v59 = vld [vmem:[%s2360_s12] ss:$0 sm:$0xff] }
 0x8b4   : > { %1637 = vrsqrt.f32 %v1077_v60  ;;  %vm1084_vm14 = vweird.f32 %v1077_v60 }
 0x8ba   : > { %v1638_v61 = vpop.eup %1637 }
 0x8bb   : > { %v1079_v62 = vmul.f32 %v1638_v61, %v1077_v60  ;;  %vm1085_vm13 = vweird.f32 %v1638_v61 }
 0x8bc   : > { %vm1086_vm15 = vmor %vm1084_vm14, %vm1085_vm13 }
 0x8bd   : > { %v1080_v63 = vmul.f32 %v1638_v61, %v1079_v62 }
 0x8bf   : > { %v1081_v1 = vmul.f32 0.5, %v1080_v63 }
 0x8c1   : > { %v1082_v2 = vsub.f32 1.5, %v1081_v1 }
 0x8c3   : > { %v1083_v3 = vmul.f32 %v1638_v61, %v1082_v2 }
 0x8c5   : > { %v1087_v5 = vsel %vm1086_vm15, %v1638_v61, %v1083_v3 }
 0x8c6   : > { %v1088_v6 = vmul.f32 %v1087_v5, %v1071_v54 }
 0x8c8   : > { %v1092_v9 = vmul.f32 %v1613_v4, %v1088_v6 }
 0x8ca   : > { %v1096_v10 = vadd.f32 %v1614_v7, %v1092_v9 }
 0x8cc   : > { %v1097_v11 = vpack.c.bf16 %v1096_v10, %v1096_v10 }
 0x8ce   : > { %1439 = vmatmul.msk.bf16.vlgmr.msrb.gmra.mxu0 %vm613_vm0, %v1097_v11 }
 0x94b   : > { %v1130_v12 = vpop.f32.mrf.mxu0 }
 0x94c   : > { %v1131_v13 = vadd.f32 %v1615_v8, %v1130_v12 }
 0x94e   : > { %v1135_v14 = vmul.f32 0.70710677, %v1131_v13  ;;  %v1134_v56 = vmul.f32 0.5, %v1131_v13 }
 0x950   : > { %v1136_v15 = vmul.f32 %v1135_v14, %v1135_v14 }
 0x952   : > { %v1137_v16 = vmin.f32 %v1136_v15, 16.0 }
 0x953   : > { %v1132_v17 = vpop.f32.mrf.mxu0 }
 0x954   : > { %v1138_v19 = vmul.f32 2.1237322e-06, %v1137_v16  ;;  %v1149_v20 = vmul.f32 3.8918573e-05, %v1137_v16 }
 0x956   : > { %v1139_v21 = vadd.f32 0.00028619796, %v1138_v19  ;;  %v1150_v22 = vadd.f32 0.001143296, %v1149_v20 }
 0x958   : > { %v1140_v24 = vmul.f32 %v1139_v21, %v1137_v16  ;;  %v1151_v25 = vmul.f32 %v1150_v22, %v1137_v16 }
 0x95a   : > { %v1152_v26 = vadd.f32 0.014752088, %v1151_v25  ;;  %v1141_v27 = vadd.f32 0.0036580483, %v1140_v24 }
 0x95c   : > { %v1153_v29 = vmul.f32 %v1152_v26, %v1137_v16  ;;  %v1142_v31 = vmul.f32 %v1141_v27, %v1137_v16 }
 0x95e   : > { %v1154_v30 = vadd.f32 0.112945676, %v1153_v29  ;;  %v1143_v35 = vadd.f32 0.05243302, %v1142_v31 }
 0x960   : > { %v1155_v33 = vmul.f32 %v1154_v30, %v1137_v16  ;;  %v1144_v38 = vmul.f32 %v1143_v35, %v1137_v16 }
 0x962   : > { %v1156_v34 = vadd.f32 0.4994258, %v1155_v33  ;;  %v1145_v40 = vadd.f32 0.18741608, %v1144_v38 }
 0x964   : > { %v1157_v36 = vmul.f32 %v1156_v34, %v1137_v16  ;;  %v1146_v39 = vmul.f32 %v1145_v40, %v1137_v16 }
 0x966   : > { %v1158_v37 = vadd.f32 1.0, %v1157_v36  ;;  %v1147_v45 = vadd.f32 1.1283791, %v1146_v39 }
 0x968   : > { %1639 = vrcp.f32 %v1158_v37  ;;  %v1170_v44 = vand.u32 2147483648, %v1158_v37  ;;  %v1168_v47 = vand.u32 2147483647, %v1158_v37  ;;  %vm1164_vm2 = vweird.f32 %v1158_v37 }
 0x969   : > { %v1148_v51 = vmul.f32 %v1147_v45, %v1135_v14 }
 0x96a   : > { %v1171_v50 = vor.u32 1.1754944e-38, %v1170_v44  ;;  %vm1169_vm4 = vcmp.eq.f32.partialorder %v1168_v47, 8.507059e+37 }
 0x96e   : > { %v1640_v41 = vpop.eup %1639 }
 0x96f   : > { %v1160_v42 = vmul.f32 %v1640_v41, %v1158_v37  ;;  %vm1165_vm1 = vweird.f32 %v1640_v41 }
 0x970   : > { %vm1166_vm3 = vmor %vm1164_vm2, %vm1165_vm1 }
 0x971   : > { %v1161_v43 = vsub.f32 1.0, %v1160_v42 }
 0x973   : > { %v1162_v46 = vmul.f32 %v1640_v41, %v1161_v43 }
 0x975   : > { %v1163_v48 = vadd.f32 %v1640_v41, %v1162_v46 }
 0x977   : > { %v1167_v52 = vsel %vm1166_vm3, %v1640_v41, %v1163_v48 }
 0x978   : > { %v1172_v53 = vsel %vm1169_vm4, %v1171_v50, %v1167_v52 }
 0x979   : > { %v1173_v54 = vmul.f32 %v1172_v53, %v1148_v51 }
 0x97b   : > { %v1440_v55 = vclamps-f32 %v1173_v54, 1.0 }
 0x97d   : > { %v1176_v57 = vadd.f32 1.0, %v1440_v55 }
 0x97f   : > { %v1177_v58 = vmul.f32 %v1176_v57, %v1134_v56 }
 0x981   : > { %v1178_v0 = vpack.c.bf16 %v1177_v58, %v1177_v58 }
 0x983   : > { %1457 = vmatmul.msk.bf16.vlgmr.msrb.gmra.mxu1 %vm1215_vm5, %v1178_v0 }
 0xa00   : > { %v1228_v60 = vpop.f32.mrf.mxu1 }
 0xa01   : > { %v1229_v61 = vadd.f32 %v1616_v59, %v1228_v60 }
 0xa03   : > { %v1232_v62 = vadd.f32 %v1229_v61, %v2287_v49 }
 0xa05   : > { %1233 = vst.msk [vmem:[%s604_s16] sm:$0xff] %vm613_vm0, %v1232_v62 }
 0xa06   : > { %1908 = shalt.err (!%p1905_p8)
}
 0xa07   : > { %1502 = dma.vmem_to_hbm [thread:$0]  (%p2110_p5), %s1248_s6, 128, %s1250_s18, %s1235_s22  }
 0xa08   : > { %v1230_v49 = vpop.f32.mrf.mxu1 }
 0xa09 PF: > { %s2390_s23 = sld [smem:[#allocation25_spill]] }
 0xa0a   : > { %s2391_s30 = sld [smem:[#allocation23_spill]] }
 0xa0f   : > { %p1549_p9 = scmp.ge.s32.totalorder %s2390_s23, 2 }
 0xa10   : > { %s1261_s28 = sand.u32 1, %s2391_s30  }
 0xa11   : > { %p1530_p10 = pnand %p1549_p9, %p2114_p6  ;;  %s1262_s27 = scalar_lea.sflag [#allocation4], %s1261_s28 }
 0xa13   : > { %p1531_p11 = pneg %p1530_p10 }
 0xa15   : > { %1946 = dma.done.wait (%p1531_p11), %s1262_s27, 128  }
 0xa16   : > { %1948 = vsyncadd (%p1531_p11), %s1262_s27, 4294967168  ;;  %s2393_s21 = sld [smem:[#allocation26_spill]]  ;;  %s2396_s18 = smov %s1955_s19 }
 0xa17   : > { %s2394_s16 = sld [smem:[#allocation24_spill]] }
 0xa18   : > { %s2395_s20 = sld [smem:[#allocation27_spill]] }
 0xa1c   : > { %p30_p12 = scmp.ge.s32.totalorder %s2393_s21, 4  }
 0xa1d   : > { %s2397_s19 = smov %s2394_s16 }
 0xa1e   :  { %32 = sbr.rel (!%p30_p12) target bundleno = 12 (0xc), region = 148 }
 0xa23   :  { %1268 = vsyncpa [#allocation3], 1 }
 0xa24   :  { %1270 = vsyncpa [#allocation3 + $0x1], 1 }
 0xa25   :  { %1271 = vsyncpa [#allocation6], 1 }
 0xa26   :  { %1272 = vsyncpa [#allocation9], 1 }
 0xa27   :  { %1273 = vsyncpa [#allocation12], 1 }
 0xa28   :  { %1274 = vsyncpa [#allocation15], 1 }
 0xa29   :  { %1275 = vsyncpa [#allocation4], 1 }
 0xa2a   :  { %1277 = vsyncpa [#allocation4 + $0x1], 1 }

</bundles_post_ra>
